<compile_context>
chip_gen: v7x
topology: tpu7x:2x2x1
jax: 0.10.0
libtpu: 0.0.40
codegen_flags: <defaults>
</compile_context>

<pallas_src>
import functools

import jax
import jax.numpy as jnp
from jax import lax
from jax.experimental import pallas as pl
from jax.experimental.pallas import tpu as pltpu

NEG_SLOPE = 0.2      # DGL GATConv default LeakyReLU negative slope
NEG_INF = -1e30      # additive mask for non-edges (kept in f32 only)


def gat1l_kernel(adj_ref, x_src_ref, x_dst_ref, w_fc_ref, attn_l_ref,
                 attn_r_ref, b_gat_ref, w_dec_ref, b_dec_ref, out_ref,
                 *, num_heads, hidden):
    # adj_ref   : [Tv, N] int8, [dst, src] layout (adj_t[v, u] = 1 iff edge u -> v)
    # x_src_ref : [N, F]   all node features (sources), grid-resident
    # x_dst_ref : [Tv, F]  features of this tile's destination nodes
    # attn_l_ref: [H, H*D] block-diagonal rows (row h = attn_l[h] in cols hD:(h+1)D)
    # attn_r_ref: [H*D, H] block-diagonal columns
    f32 = jnp.float32
    bf16 = jnp.bfloat16

    w_fc = w_fc_ref[...].astype(bf16)
    # --- GATConv fc projection on the MXU (bf16 operands, f32 accumulation) ---
    feat_src = jnp.dot(x_src_ref[...].astype(bf16), w_fc,
                       preferred_element_type=f32)                  # [N, H*D]
    feat_dst = jnp.dot(x_dst_ref[...].astype(bf16), w_fc,
                       preferred_element_type=f32)                  # [Tv, H*D]
    feat_src_b = feat_src.astype(bf16)

    # el per source node, all heads, directly in lane layout: [H, N]
    el_rows = lax.dot_general(
        attn_l_ref[...].astype(bf16), feat_src_b,
        dimension_numbers=(((1,), (1,)), ((), ())),
        preferred_element_type=f32)                                 # [H, N]
    # er per destination node of this tile, all heads: [Tv, H]
    er_cols = jnp.dot(feat_dst.astype(bf16), attn_r_ref[...].astype(bf16),
                      preferred_element_type=f32)                   # [Tv, H]

    # Head-invariant additive adjacency mask (hoisted out of the head loop).
    # Precondition: every destination has >= 1 incoming edge (e.g. self-loops),
    # otherwise the softmax denominator would be 0 (same failure as DGL).
    adjf = adj_ref[...].astype(f32)                                 # [Tv, N]
    bias = jnp.where(adjf > 0, 0.0, NEG_INF)                        # [Tv, N]

    tv, c = out_ref.shape
    logits = jnp.zeros((tv, c), f32)
    for h in range(num_heads):                                      # static, small H
        lo = h * hidden
        hi = lo + hidden
        fh = feat_src_b[:, lo:hi]                                   # [N, D] bf16
        # e[v, u] = LeakyReLU(el[u] + er[v]) + mask, in [dst, src] layout
        e = er_cols[:, h:h + 1] + el_rows[h:h + 1, :]               # [Tv, N]
        e = jnp.where(e > 0, e, NEG_SLOPE * e)                      # LeakyReLU(0.2)
        e = e + bias
        # edge softmax over incoming edges (source axis = lanes)
        m = jnp.max(e, axis=-1, keepdims=True)                      # [Tv, 1]
        p = jnp.exp(e - m)                                          # non-edges underflow to 0
        denom = jnp.sum(p, axis=-1, keepdims=True)                  # [Tv, 1]
        # deferred normalization: aggregate first (MXU), then EUP reciprocal
        oh = jnp.dot(p.astype(bf16), fh, preferred_element_type=f32)   # [Tv, D]
        oh = oh * pl.reciprocal(denom, approx=True)
        # + GATConv bias, reshape(N,-1)+relu, then this head's decoder slice
        hh = jnp.maximum(oh + b_gat_ref[:, lo:hi], 0.0)             # [Tv, D]
        # TODO(synk): F.dropout(training=True) is stochastic; treated as identity.
        logits = logits + jnp.dot(hh.astype(bf16),
                                  w_dec_ref[lo:hi, :].astype(bf16),
                                  preferred_element_type=f32)       # [Tv, C]

    logits = logits + b_dec_ref[...]
    # NOTE: output last dim (C) is lane-sparse; traffic is O(N*C) so the masked
    # stores are negligible here and the decoder stays fused with the GAT layer.
    out_ref[...] = jax.nn.sigmoid(logits).astype(out_ref.dtype)


def _block_diag_rows(attn):
    # attn: [H, D] -> [H, H*D], row h holds attn[h] in columns h*D:(h+1)*D.
    num_heads, d = attn.shape
    out = jnp.zeros((num_heads, num_heads * d), attn.dtype)
    for h in range(num_heads):
        out = out.at[h, h * d:(h + 1) * d].set(attn[h])
    return out


def gat_1l_forward(x, adj, params, *, num_heads, hidden, tile_v=256):
    n, f = x.shape
    hd = num_heads * hidden
    c = params["w_dec"].shape[1]

    # [dst, src] layout + int8: the only O(N^2) HBM stream shrinks 4x and the
    # in-kernel aggregation needs no transpose.
    adj_t = jnp.transpose(adj).astype(jnp.int8)
    attn_l_rows = _block_diag_rows(params["attn_l"])                      # [H, H*D]
    attn_r_cols = jnp.transpose(_block_diag_rows(params["attn_r"]))       # [H*D, H]

    tv = tile_v if (n % tile_v == 0) else n       # keep the tile dividing N
    grid = (n // tv,)
    kernel = functools.partial(gat1l_kernel, num_heads=num_heads, hidden=hidden)

    return pl.pallas_call(
        kernel,
        out_shape=jax.ShapeDtypeStruct((n, c), jnp.float32),
        grid=grid,
        in_specs=[
            pl.BlockSpec((tv, n), lambda j: (j, 0)),          # adj_t tile (pipelined)
            pl.BlockSpec((n, f), lambda j: (0, 0)),           # x, all sources (resident)
            pl.BlockSpec((tv, f), lambda j: (j, 0)),          # x rows of this dst tile
            pl.BlockSpec((f, hd), lambda j: (0, 0)),          # w_fc
            pl.BlockSpec((num_heads, hd), lambda j: (0, 0)),  # attn_l (block-diag rows)
            pl.BlockSpec((hd, num_heads), lambda j: (0, 0)),  # attn_r (block-diag cols)
            pl.BlockSpec((1, hd), lambda j: (0, 0)),          # b_gat
            pl.BlockSpec((hd, c), lambda j: (0, 0)),          # w_dec
            pl.BlockSpec((1, c), lambda j: (0, 0)),           # b_dec
        ],
        out_specs=pl.BlockSpec((tv, c), lambda j: (j, 0)),
        compiler_params=pltpu.CompilerParams(
            dimension_semantics=("parallel",),                # shard dst tiles over TCs
            vmem_limit_bytes=64 * 1024 * 1024),
    )(adj_t, x, x, params["w_fc"], attn_l_rows, attn_r_cols,
      params["b_gat"], params["w_dec"], params["b_dec"])


def init_params(key, in_feats, hidden, num_heads, num_classes):
    k1, k2, k3, k4, k5 = jax.random.split(key, 5)
    hd = hidden * num_heads
    return {
        "w_fc":   0.1 * jax.random.normal(k1, (in_feats, hd), jnp.float32),
        "attn_l": 0.1 * jax.random.normal(k2, (num_heads, hidden), jnp.float32),
        "attn_r": 0.1 * jax.random.normal(k3, (num_heads, hidden), jnp.float32),
        "b_gat":  jnp.zeros((1, hd), jnp.float32),
        "w_dec":  0.1 * jax.random.normal(k4, (hd, num_classes), jnp.float32),
        "b_dec":  0.01 * jax.random.normal(k5, (1, num_classes), jnp.float32),
    }


if __name__ == "__main__":
    N, IN_FEATS, HIDDEN, HEADS, CLASSES = 128, 32, 32, 2, 8
    key = jax.random.PRNGKey(0)
    kx, kadj, kparams = jax.random.split(key, 3)

    # Node features and a sparse random graph. Self-loops guarantee every
    # destination has at least one incoming edge (edge-softmax precondition).
    x = jax.random.normal(kx, (N, IN_FEATS), jnp.float32)
    adj = (jax.random.uniform(kadj, (N, N)) < 0.05).astype(jnp.float32)
    adj = jnp.maximum(adj, jnp.eye(N, dtype=jnp.float32))

    params = init_params(kparams, IN_FEATS, HIDDEN, HEADS, CLASSES)

    # tile_v=64 exercises a real multi-step, pipelined destination grid even at N=128.
    out = gat_1l_forward(x, adj, params, num_heads=HEADS, hidden=HIDDEN, tile_v=64)
    out = jax.block_until_ready(out)
    assert out.shape == (N, CLASSES)
    assert bool(jnp.all(jnp.isfinite(out)))
    print("KERNEL_OK")
</pallas_src>

<mosaic_0001>
module attributes {stable_mosaic.version = 11 : i64} {
  func.func @gat1l_kernel(%arg0: i32, %arg1: memref<64x128xi8, #tpu.memory_space<vmem>>, %arg2: memref<128x32xf32, #tpu.memory_space<vmem>>, %arg3: memref<64x32xf32, #tpu.memory_space<vmem>>, %arg4: memref<32x64xf32, #tpu.memory_space<vmem>>, %arg5: memref<2x64xf32, #tpu.memory_space<vmem>>, %arg6: memref<64x2xf32, #tpu.memory_space<vmem>>, %arg7: memref<1x64xf32, #tpu.memory_space<vmem>>, %arg8: memref<64x8xf32, #tpu.memory_space<vmem>>, %arg9: memref<1x8xf32, #tpu.memory_space<vmem>>, %arg10: memref<64x8xf32, #tpu.memory_space<vmem>>) attributes {dimension_semantics = [#tpu.dimension_semantics<parallel>], iteration_bounds = array<i64: 2>, scalar_prefetch = 0 : i64, scratch_operands = 0 : i64, tpu.core_type = #tpu.core_type<tc>, window_params = [{transform_indices = @transform_0, window_bounds = array<i64: 64, 128>}, {pipeline_mode = #tpu.pipeline_mode<synchronous>, transform_indices = @transform_1, window_bounds = array<i64: 128, 32>}, {transform_indices = @transform_2, window_bounds = array<i64: 64, 32>}, {pipeline_mode = #tpu.pipeline_mode<synchronous>, transform_indices = @transform_3, window_bounds = array<i64: 32, 64>}, {pipeline_mode = #tpu.pipeline_mode<synchronous>, transform_indices = @transform_4, window_bounds = array<i64: 2, 64>}, {pipeline_mode = #tpu.pipeline_mode<synchronous>, transform_indices = @transform_5, window_bounds = array<i64: 64, 2>}, {pipeline_mode = #tpu.pipeline_mode<synchronous>, transform_indices = @transform_6, window_bounds = array<i64: 1, 64>}, {pipeline_mode = #tpu.pipeline_mode<synchronous>, transform_indices = @transform_7, window_bounds = array<i64: 64, 8>}, {pipeline_mode = #tpu.pipeline_mode<synchronous>, transform_indices = @transform_8, window_bounds = array<i64: 1, 8>}, {transform_indices = @transform_9, window_bounds = array<i64: 64, 8>}]} {
    %c0 = arith.constant 0 : index
    %c0_0 = arith.constant 0 : index
    %0 = vector.load %arg4[%c0, %c0_0] : memref<32x64xf32, #tpu.memory_space<vmem>>, vector<32x64xf32>
    %1 = arith.truncf %0 : vector<32x64xf32> to vector<32x64xbf16>
    %c0_1 = arith.constant 0 : index
    %c0_2 = arith.constant 0 : index
    %2 = vector.load %arg2[%c0_1, %c0_2] : memref<128x32xf32, #tpu.memory_space<vmem>>, vector<128x32xf32>
    %3 = arith.truncf %2 : vector<128x32xf32> to vector<128x32xbf16>
    %cst = arith.constant dense<0.000000e+00> : vector<128x64xf32>
    %4 = tpu.matmul %3, %1, %cst {dimension_numbers = #tpu.dot_dimension_numbers<[1], [0], [0], [1], [0, 0, 1, 1], [], []>} : vector<128x32xbf16>, vector<32x64xbf16>, vector<128x64xf32> -> vector<128x64xf32>
    %c0_3 = arith.constant 0 : index
    %c0_4 = arith.constant 0 : index
    %5 = vector.load %arg3[%c0_3, %c0_4] : memref<64x32xf32, #tpu.memory_space<vmem>>, vector<64x32xf32>
    %6 = arith.truncf %5 : vector<64x32xf32> to vector<64x32xbf16>
    %cst_5 = arith.constant dense<0.000000e+00> : vector<64x64xf32>
    %7 = tpu.matmul %6, %1, %cst_5 {dimension_numbers = #tpu.dot_dimension_numbers<[1], [0], [0], [1], [0, 0, 1, 1], [], []>} : vector<64x32xbf16>, vector<32x64xbf16>, vector<64x64xf32> -> vector<64x64xf32>
    %8 = arith.truncf %4 : vector<128x64xf32> to vector<128x64xbf16>
    %c0_6 = arith.constant 0 : index
    %c0_7 = arith.constant 0 : index
    %9 = vector.load %arg5[%c0_6, %c0_7] : memref<2x64xf32, #tpu.memory_space<vmem>>, vector<2x64xf32>
    %10 = arith.truncf %9 : vector<2x64xf32> to vector<2x64xbf16>
    %cst_8 = arith.constant dense<0.000000e+00> : vector<2x128xf32>
    %11 = tpu.matmul %10, %8, %cst_8 {dimension_numbers = #tpu.dot_dimension_numbers<[1], [1], [0], [0], [0, 0, 1, 0], [], []>} : vector<2x64xbf16>, vector<128x64xbf16>, vector<2x128xf32> -> vector<2x128xf32>
    %12 = arith.truncf %7 : vector<64x64xf32> to vector<64x64xbf16>
    %c0_9 = arith.constant 0 : index
    %c0_10 = arith.constant 0 : index
    %13 = vector.load %arg6[%c0_9, %c0_10] : memref<64x2xf32, #tpu.memory_space<vmem>>, vector<64x2xf32>
    %14 = arith.truncf %13 : vector<64x2xf32> to vector<64x2xbf16>
    %cst_11 = arith.constant dense<0.000000e+00> : vector<64x2xf32>
    %15 = tpu.matmul %12, %14, %cst_11 {dimension_numbers = #tpu.dot_dimension_numbers<[1], [0], [0], [1], [0, 0, 1, 1], [], []>} : vector<64x64xbf16>, vector<64x2xbf16>, vector<64x2xf32> -> vector<64x2xf32>
    %c0_12 = arith.constant 0 : index
    %c0_13 = arith.constant 0 : index
    %16 = vector.load %arg1[%c0_12, %c0_13] : memref<64x128xi8, #tpu.memory_space<vmem>>, vector<64x128xi8>
    %17 = arith.sitofp %16 : vector<64x128xi8> to vector<64x128xf32>
    %cst_14 = arith.constant 0.000000e+00 : f32
    %18 = vector.broadcast %cst_14 : f32 to vector<64x128xf32>
    %19 = arith.cmpf ogt, %17, %18 : vector<64x128xf32>
    %cst_15 = arith.constant 0.000000e+00 : f32
    %cst_16 = arith.constant -1.000000e+30 : f32
    %20 = vector.broadcast %cst_15 : f32 to vector<64x128xf32>
    %21 = vector.broadcast %cst_16 : f32 to vector<64x128xf32>
    %22 = arith.select %19, %20, %21 : vector<64x128xi1>, vector<64x128xf32>
    %cst_17 = arith.constant 0.000000e+00 : f32
    %23 = vector.broadcast %cst_17 : f32 to vector<64x8xf32>
    %24 = vector.extract_strided_slice %8 {offsets = [0, 0], sizes = [128, 32], strides = [1, 1]} : vector<128x64xbf16> to vector<128x32xbf16>
    %25 = vector.extract_strided_slice %15 {offsets = [0, 0], sizes = [64, 1], strides = [1, 1]} : vector<64x2xf32> to vector<64x1xf32>
    %26 = vector.extract_strided_slice %11 {offsets = [0, 0], sizes = [1, 128], strides = [1, 1]} : vector<2x128xf32> to vector<1x128xf32>
    %27 = vector.broadcast %25 : vector<64x1xf32> to vector<64x128xf32>
    %28 = vector.broadcast %26 : vector<1x128xf32> to vector<64x128xf32>
    %29 = arith.addf %27, %28 : vector<64x128xf32>
    %cst_18 = arith.constant 0.000000e+00 : f32
    %30 = vector.broadcast %cst_18 : f32 to vector<64x128xf32>
    %31 = arith.cmpf ogt, %29, %30 : vector<64x128xf32>
    %cst_19 = arith.constant 2.000000e-01 : f32
    %32 = vector.broadcast %cst_19 : f32 to vector<64x128xf32>
    %33 = arith.mulf %32, %29 : vector<64x128xf32>
    %34 = arith.select %31, %29, %33 : vector<64x128xi1>, vector<64x128xf32>
    %35 = arith.addf %34, %22 : vector<64x128xf32>
    %cst_20 = arith.constant dense<0xFF800000> : vector<64xf32>
    %36 = vector.multi_reduction <maximumf>, %35, %cst_20 [1] : vector<64x128xf32> to vector<64xf32>
    %37 = vector.shape_cast %36 : vector<64xf32> to vector<64x1xf32>
    %38 = vector.broadcast %37 : vector<64x1xf32> to vector<64x128xf32>
    %39 = arith.subf %35, %38 : vector<64x128xf32>
    %40 = math.exp %39 : vector<64x128xf32>
    %cst_21 = arith.constant dense<0.000000e+00> : vector<64xf32>
    %41 = vector.multi_reduction <add>, %40, %cst_21 [1] : vector<64x128xf32> to vector<64xf32>
    %42 = vector.shape_cast %41 : vector<64xf32> to vector<64x1xf32>
    %43 = arith.truncf %40 : vector<64x128xf32> to vector<64x128xbf16>
    %cst_22 = arith.constant dense<0.000000e+00> : vector<64x32xf32>
    %44 = tpu.matmul %43, %24, %cst_22 {dimension_numbers = #tpu.dot_dimension_numbers<[1], [0], [0], [1], [0, 0, 1, 1], [], []>} : vector<64x128xbf16>, vector<128x32xbf16>, vector<64x32xf32> -> vector<64x32xf32>
    %45 = tpu.reciprocal %42 {approx = true} : vector<64x1xf32> -> vector<64x1xf32>
    %46 = vector.broadcast %45 : vector<64x1xf32> to vector<64x32xf32>
    %47 = arith.mulf %44, %46 : vector<64x32xf32>
    %c0_23 = arith.constant 0 : index
    %c0_24 = arith.constant 0 : index
    %48 = vector.load %arg7[%c0_23, %c0_24] : memref<1x64xf32, #tpu.memory_space<vmem>>, vector<1x32xf32>
    %49 = vector.broadcast %48 : vector<1x32xf32> to vector<64x32xf32>
    %50 = arith.addf %47, %49 : vector<64x32xf32>
    %cst_25 = arith.constant 0.000000e+00 : f32
    %51 = vector.broadcast %cst_25 : f32 to vector<64x32xf32>
    %52 = arith.maximumf %50, %51 : vector<64x32xf32>
    %53 = arith.truncf %52 : vector<64x32xf32> to vector<64x32xbf16>
    %c0_26 = arith.constant 0 : index
    %c0_27 = arith.constant 0 : index
    %54 = vector.load %arg8[%c0_26, %c0_27] : memref<64x8xf32, #tpu.memory_space<vmem>>, vector<32x8xf32>
    %55 = arith.truncf %54 : vector<32x8xf32> to vector<32x8xbf16>
    %cst_28 = arith.constant dense<0.000000e+00> : vector<64x8xf32>
    %56 = tpu.matmul %53, %55, %cst_28 {dimension_numbers = #tpu.dot_dimension_numbers<[1], [0], [0], [1], [0, 0, 1, 1], [], []>} : vector<64x32xbf16>, vector<32x8xbf16>, vector<64x8xf32> -> vector<64x8xf32>
    %57 = arith.addf %23, %56 : vector<64x8xf32>
    %58 = vector.extract_strided_slice %8 {offsets = [0, 32], sizes = [128, 32], strides = [1, 1]} : vector<128x64xbf16> to vector<128x32xbf16>
    %59 = vector.extract_strided_slice %15 {offsets = [0, 1], sizes = [64, 1], strides = [1, 1]} : vector<64x2xf32> to vector<64x1xf32>
    %60 = vector.extract_strided_slice %11 {offsets = [1, 0], sizes = [1, 128], strides = [1, 1]} : vector<2x128xf32> to vector<1x128xf32>
    %61 = vector.broadcast %59 : vector<64x1xf32> to vector<64x128xf32>
    %62 = vector.broadcast %60 : vector<1x128xf32> to vector<64x128xf32>
    %63 = arith.addf %61, %62 : vector<64x128xf32>
    %cst_29 = arith.constant 0.000000e+00 : f32
    %64 = vector.broadcast %cst_29 : f32 to vector<64x128xf32>
    %65 = arith.cmpf ogt, %63, %64 : vector<64x128xf32>
    %cst_30 = arith.constant 2.000000e-01 : f32
    %66 = vector.broadcast %cst_30 : f32 to vector<64x128xf32>
    %67 = arith.mulf %66, %63 : vector<64x128xf32>
    %68 = arith.select %65, %63, %67 : vector<64x128xi1>, vector<64x128xf32>
    %69 = arith.addf %68, %22 : vector<64x128xf32>
    %cst_31 = arith.constant dense<0xFF800000> : vector<64xf32>
    %70 = vector.multi_reduction <maximumf>, %69, %cst_31 [1] : vector<64x128xf32> to vector<64xf32>
    %71 = vector.shape_cast %70 : vector<64xf32> to vector<64x1xf32>
    %72 = vector.broadcast %71 : vector<64x1xf32> to vector<64x128xf32>
    %73 = arith.subf %69, %72 : vector<64x128xf32>
    %74 = math.exp %73 : vector<64x128xf32>
    %cst_32 = arith.constant dense<0.000000e+00> : vector<64xf32>
    %75 = vector.multi_reduction <add>, %74, %cst_32 [1] : vector<64x128xf32> to vector<64xf32>
    %76 = vector.shape_cast %75 : vector<64xf32> to vector<64x1xf32>
    %77 = arith.truncf %74 : vector<64x128xf32> to vector<64x128xbf16>
    %cst_33 = arith.constant dense<0.000000e+00> : vector<64x32xf32>
    %78 = tpu.matmul %77, %58, %cst_33 {dimension_numbers = #tpu.dot_dimension_numbers<[1], [0], [0], [1], [0, 0, 1, 1], [], []>} : vector<64x128xbf16>, vector<128x32xbf16>, vector<64x32xf32> -> vector<64x32xf32>
    %79 = tpu.reciprocal %76 {approx = true} : vector<64x1xf32> -> vector<64x1xf32>
    %80 = vector.broadcast %79 : vector<64x1xf32> to vector<64x32xf32>
    %81 = arith.mulf %78, %80 : vector<64x32xf32>
    %c0_34 = arith.constant 0 : index
    %c32 = arith.constant 32 : index
    %82 = vector.load %arg7[%c0_34, %c32] : memref<1x64xf32, #tpu.memory_space<vmem>>, vector<1x32xf32>
    %83 = vector.broadcast %82 : vector<1x32xf32> to vector<64x32xf32>
    %84 = arith.addf %81, %83 : vector<64x32xf32>
    %cst_35 = arith.constant 0.000000e+00 : f32
    %85 = vector.broadcast %cst_35 : f32 to vector<64x32xf32>
    %86 = arith.maximumf %84, %85 : vector<64x32xf32>
    %87 = arith.truncf %86 : vector<64x32xf32> to vector<64x32xbf16>
    %c32_36 = arith.constant 32 : index
    %c0_37 = arith.constant 0 : index
    %88 = vector.load %arg8[%c32_36, %c0_37] : memref<64x8xf32, #tpu.memory_space<vmem>>, vector<32x8xf32>
    %89 = arith.truncf %88 : vector<32x8xf32> to vector<32x8xbf16>
    %cst_38 = arith.constant dense<0.000000e+00> : vector<64x8xf32>
    %90 = tpu.matmul %87, %89, %cst_38 {dimension_numbers = #tpu.dot_dimension_numbers<[1], [0], [0], [1], [0, 0, 1, 1], [], []>} : vector<64x32xbf16>, vector<32x8xbf16>, vector<64x8xf32> -> vector<64x8xf32>
    %91 = arith.addf %57, %90 : vector<64x8xf32>
    %c0_39 = arith.constant 0 : index
    %c0_40 = arith.constant 0 : index
    %92 = vector.load %arg9[%c0_39, %c0_40] : memref<1x8xf32, #tpu.memory_space<vmem>>, vector<1x8xf32>
    %93 = vector.broadcast %92 : vector<1x8xf32> to vector<64x8xf32>
    %94 = arith.addf %91, %93 : vector<64x8xf32>
    %95 = arith.negf %94 : vector<64x8xf32>
    %96 = math.exp %95 : vector<64x8xf32>
    %cst_41 = arith.constant 1.000000e+00 : f32
    %97 = vector.broadcast %cst_41 : f32 to vector<64x8xf32>
    %98 = arith.addf %97, %96 : vector<64x8xf32>
    %99 = arith.divf %97, %98 : vector<64x8xf32>
    %c0_42 = arith.constant 0 : index
    %c0_43 = arith.constant 0 : index
    %100 = vector.load %arg10[%c0_42, %c0_43] : memref<64x8xf32, #tpu.memory_space<vmem>>, vector<64x8xf32>
    tpu.vector_store %arg10[%c0_42, %c0_43], %99 {strides = array<i32>} : memref<64x8xf32, #tpu.memory_space<vmem>>, vector<64x8xf32>,
    return
  }
  func.func @transform_0(%arg0: i32) -> (i32, i32) {
    %c0_i32 = arith.constant 0 : i32
    %c0_i32_0 = arith.constant 0 : i32
    return %arg0, %c0_i32 : i32, i32
  }
  func.func @transform_1(%arg0: i32) -> (i32, i32) {
    %c0_i32 = arith.constant 0 : i32
    %c0_i32_0 = arith.constant 0 : i32
    %c0_i32_1 = arith.constant 0 : i32
    return %c0_i32, %c0_i32_0 : i32, i32
  }
  func.func @transform_2(%arg0: i32) -> (i32, i32) {
    %c0_i32 = arith.constant 0 : i32
    %c0_i32_0 = arith.constant 0 : i32
    return %arg0, %c0_i32 : i32, i32
  }
  func.func @transform_3(%arg0: i32) -> (i32, i32) {
    %c0_i32 = arith.constant 0 : i32
    %c0_i32_0 = arith.constant 0 : i32
    %c0_i32_1 = arith.constant 0 : i32
    return %c0_i32, %c0_i32_0 : i32, i32
  }
  func.func @transform_4(%arg0: i32) -> (i32, i32) {
    %c0_i32 = arith.constant 0 : i32
    %c0_i32_0 = arith.constant 0 : i32
    %c0_i32_1 = arith.constant 0 : i32
    return %c0_i32, %c0_i32_0 : i32, i32
  }
  func.func @transform_5(%arg0: i32) -> (i32, i32) {
    %c0_i32 = arith.constant 0 : i32
    %c0_i32_0 = arith.constant 0 : i32
    %c0_i32_1 = arith.constant 0 : i32
    return %c0_i32, %c0_i32_0 : i32, i32
  }
  func.func @transform_6(%arg0: i32) -> (i32, i32) {
    %c0_i32 = arith.constant 0 : i32
    %c0_i32_0 = arith.constant 0 : i32
    %c0_i32_1 = arith.constant 0 : i32
    return %c0_i32, %c0_i32_0 : i32, i32
  }
  func.func @transform_7(%arg0: i32) -> (i32, i32) {
    %c0_i32 = arith.constant 0 : i32
    %c0_i32_0 = arith.constant 0 : i32
    %c0_i32_1 = arith.constant 0 : i32
    return %c0_i32, %c0_i32_0 : i32, i32
  }
  func.func @transform_8(%arg0: i32) -> (i32, i32) {
    %c0_i32 = arith.constant 0 : i32
    %c0_i32_0 = arith.constant 0 : i32
    %c0_i32_1 = arith.constant 0 : i32
    return %c0_i32, %c0_i32_0 : i32, i32
  }
  func.func @transform_9(%arg0: i32) -> (i32, i32) {
    %c0_i32 = arith.constant 0 : i32
    %c0_i32_0 = arith.constant 0 : i32
    return %arg0, %c0_i32 : i32, i32
  }
}

</mosaic_0001>

<bundles_post_ra>
// kernel: tpu_custom_call.1
= control target key start
LH: loop header
LB: loop body
LE: loop exit
PB: predicated region body
PF: predicated region fallthrough
CT: control target
= control target key end

     0   :  { %s3510_s0 = inlined_call_operand.hbm [shape: s8[128,128], index: 0, kind: input, shape index: {}]   ;;  %s3511_s1 = inlined_call_operand.hbm [shape: f32[128,32], index: 1, kind: input, shape index: {}]   ;;  %s3512_s2 = inlined_call_operand.hbm [shape: f32[128,32], index: 2, kind: input, shape index: {}]   ;;  %s3513_s3 = inlined_call_operand.hbm [shape: f32[32,64], index: 3, kind: input, shape index: {}]   ;;  %s3514_s4 = inlined_call_operand.hbm [shape: f32[2,64], index: 4, kind: input, shape index: {}]   ;;  %s3515_s5 = inlined_call_operand.hbm [shape: f32[64,2], index: 5, kind: input, shape index: {}]   ;;  %s3516_s6 = inlined_call_operand.hbm [shape: f32[1,64], index: 6, kind: input, shape index: {}]   ;;  %s3517_s7 = inlined_call_operand.hbm [shape: f32[64,8], index: 7, kind: input, shape index: {}]   ;;  %s3518_s8 = inlined_call_operand.hbm [shape: f32[1,8], index: 8, kind: input, shape index: {}]   ;;  %s3519_s9 = inlined_call_operand.hbm [shape: f32[128,8], index: 9, kind: output, shape index: {}]  }
   0x1   :  { %3539 = sst [smem:[#allocation31_spill]] %s3510_s0 }
   0x2   :  { %3540 = sst [smem:[#allocation32_spill]] %s3511_s1 }
   0x3   :  { %3541 = sst [smem:[#allocation33_spill]] %s3513_s3 }
   0x4   :  { %3542 = sst [smem:[#allocation34_spill]] %s3514_s4 }
   0x5   :  { %3543 = sst [smem:[#allocation35_spill]] %s3516_s6 }
   0x6   :  { %3544 = sst [smem:[#allocation36_spill]] %s3519_s9 }
   0x7   :  { %14 = vsyncpa [#allocation3], 0 }
   0x8   :  { %16 = vsyncpa [#allocation3 + $0x1], 0 }
   0x9   :  { %17 = vsyncpa [#allocation6], 0 }
   0xa   :  { %18 = vsyncpa [#allocation10], 0 }
   0xb   :  { %19 = vsyncpa [#allocation13], 0 }
   0xc   :  { %20 = vsyncpa [#allocation16], 0 }
   0xd   :  { %21 = vsyncpa [#allocation4], 0 }
   0xe   :  { %23 = vsyncpa [#allocation4 + $0x1], 0  ;;  %s2810_s30 = smov 0   ;;  %s2812_s10 = smov 0  }
   0xf   :  { %s2814_s11 = smov 0   ;;  %s2816_s12 = smov 0  }
  0x10 LB: > { %3545 = sst [smem:[#allocation26_spill]] %s2726_s30  ;;  %s2740_s13 = smov [#allocation5]   ;;  %s2738_s12 = sphi %s2816_s12, %s3586_s12   ;;  %s2734_s11 = sphi %s2814_s11, %s3588_s11   ;;  %s2730_s10 = sphi %s2812_s10, %s3590_s10   ;;  %s2726_s30 = sphi %s2810_s30, %s3589_s30  }
  0x11   : > { %3546 = sst [smem:[#allocation27_spill]] %s2734_s11  ;;  %s271_s14 = sshll.u32 %s2740_s13, 4  ;;  %s2836_s14 = int_to_ptr.vmem [resolvable:$true] %s271_s14 }
  0x12   : > { %s2831_s15 = sadd.s32 4294967295, %s2738_s12   ;;  %p1871_p0 = scmp.ge.s32.totalorder %s2738_s12, 1 }
  0x13   : > { %p3526_p1 = scmp.eq.s32.totalorder %s2831_s15, 0  ;;  %p259_p2 = scmp.lt.s32.totalorder %s2738_s12, 3 }
  0x14   : > { %s2741_s17 = smov [#allocation9]   ;;  %s2742_s20 = smov [#allocation12]  }
  0x15   : > { %p2838_p3 = pnand %p1871_p0, %p259_p2  ;;  %s298_s18 = sshll.u32 %s2741_s17, 4  ;;  %s2851_s18 = int_to_ptr.vmem [resolvable:$true] %s298_s18 }
  0x16   : > { %s322_s21 = sshll.u32 %s2742_s20, 4  ;;  %s3549_s1 = sld [smem:[#allocation32_spill]]  ;;  %s2853_s21 = int_to_ptr.vmem [resolvable:$true] %s322_s21 }
  0x17   : > { %s3547_s16 = scalar_select %p2838_p3, 1, 0 }
  0x18   : > { %p2191_p5 = pneg %p2838_p3 }
  0x1a   : > { %p2847_p6 = pnand %p2191_p5, %p3526_p1 }
  0x1c   : > { %s3548_s19 = scalar_select %p2847_p6, 1, 0 }
  0x1d   : > { %s2392_s24 = scalar_lea.hbm %s3549_s1, 2048  ;;  %p2863_p8 = pneg %p2847_p6 }
  0x1e   : > { %p2393_p7 = scmp.ne.s32.totalorder %s3549_s1, %s2392_s24  ;;  %p2399_p11 = scmp.lt.u32.totalorder %s2392_s24, %s3549_s1 }
  0x20   : > { %p2395_p9 = pnand %p2863_p8, %p2393_p7 }
  0x22   : > { %p2396_p10 = pneg %p2395_p9 }
  0x24   : > { %p2401_p12 = pnand %p2399_p11, %p2396_p10 }
  0x26   : > { %2404 = shalt.err (!%p2401_p12)
}
  0x27   : > { %s2405_s13 = scalar_lea.vmem %s2836_s14, 2048  ;;  %p2413_p5 = scmp.lt.s32.totalorder %s2836_s14, %s2836_s14 }
  0x28   : > { %p2406_p13 = scmp.ne.s32.totalorder %s2836_s14, %s2405_s13  ;;  %p2414_p4 = scmp.lt.s32.totalorder %s2405_s13, %s2405_s13 }
  0x2a   : > { %p2408_p0 = pnand %p2406_p13, %p2863_p8  ;;  %p2415_p7 = por %p2414_p4, %p2413_p5 }
  0x2c   : > { %p2409_p2 = pneg %p2408_p0 }
  0x2e   : > { %p2416_p9 = pnand %p2415_p7, %p2409_p2 }
  0x30   : > { %2419 = shalt.err (!%p2416_p9)
}
  0x31   : > { %s3522_s17 = smov 128   ;;  %s3524_s20 = smov 8  }
  0x32   : > { %2194 = dma.hbm_to_vmem [thread:$0]  (!%p2847_p6), %s3549_s1, 2048, %s2836_s14, [#allocation6], %s3522_s17, %s3522_s17, %s3524_s20  }
  0x33   : > { %s3551_s4 = sld [smem:[#allocation34_spill]] }
  0x39   : > { %s2420_s26 = scalar_lea.hbm %s3551_s4, 32 }
  0x3a   : > { %p2421_p4 = scmp.ne.s32.totalorder %s3551_s4, %s2420_s26  ;;  %p2427_p12 = scmp.lt.u32.totalorder %s2420_s26, %s3551_s4 }
  0x3c   : > { %p2423_p10 = pnand %p2421_p4, %p2863_p8 }
  0x3e   : > { %p2424_p11 = pneg %p2423_p10 }
  0x40   : > { %p2429_p13 = pnand %p2427_p12, %p2424_p11 }
  0x42   : > { %2432 = shalt.err (!%p2429_p13)
}
  0x43   : > { %s2433_s14 = scalar_lea.vmem %s2851_s18, 32  ;;  %p2441_p7 = scmp.lt.s32.totalorder %s2851_s18, %s2851_s18 }
  0x44   : > { %p2434_p0 = scmp.ne.s32.totalorder %s2851_s18, %s2433_s14  ;;  %p2442_p9 = scmp.lt.s32.totalorder %s2433_s14, %s2433_s14 }
  0x46   : > { %p2436_p2 = pnand %p2434_p0, %p2863_p8  ;;  %p2443_p4 = por %p2442_p9, %p2441_p7 }
  0x48   : > { %p2437_p5 = pneg %p2436_p2 }
  0x4a   : > { %p2444_p10 = pnand %p2443_p4, %p2437_p5 }
  0x4c   : > { %2447 = shalt.err (!%p2444_p10)
}
  0x4d   : > { %2200 = dma.hbm_to_vmem [thread:$0]  (!%p2847_p6), %s3551_s4, 32, %s2851_s18, [#allocation10]  }
  0x4e   : > { %s3552_s6 = sld [smem:[#allocation35_spill]] }
  0x54   : > { %s2448_s25 = scalar_lea.hbm %s3552_s6, 16 }
  0x55   : > { %p2449_p11 = scmp.ne.s32.totalorder %s3552_s6, %s2448_s25  ;;  %p2455_p0 = scmp.lt.u32.totalorder %s2448_s25, %s3552_s6 }
  0x57   : > { %p2451_p12 = pnand %p2449_p11, %p2863_p8 }
  0x59   : > { %p2452_p13 = pneg %p2451_p12 }
  0x5b   : > { %p2457_p2 = pnand %p2455_p0, %p2452_p13 }
  0x5d   : > { %2460 = shalt.err (!%p2457_p2)
}
  0x5e   : > { %s2461_s18 = scalar_lea.vmem %s2853_s21, 16  ;;  %s2468_s14 = scalar_lea.vmem %s2853_s21, 32 }
  0x5f   : > { %p2462_p5 = scmp.ne.s32.totalorder %s2853_s21, %s2461_s18  ;;  %p2469_p4 = scmp.lt.s32.totalorder %s2853_s21, %s2853_s21 }
  0x60   : > { %p2470_p10 = scmp.lt.s32.totalorder %s2468_s14, %s2461_s18 }
  0x61   : > { %p2464_p7 = pnand %p2462_p5, %p2863_p8 }
  0x62   : > { %p2471_p11 = por %p2470_p10, %p2469_p4 }
  0x63   : > { %p2465_p9 = pneg %p2464_p7 }
  0x65   : > { %p2472_p12 = pnand %p2471_p11, %p2465_p9 }
  0x67   : > { %2475 = shalt.err (!%p2472_p12)
}
  0x68   : > { %2206 = dma.hbm_to_vmem [thread:$0]  (!%p2847_p6), %s3552_s6, 16, %s2853_s21, [#allocation13]  }
  0x69   : > { %s1870_s23 = sadd.s32 4294967294, %s2738_s12   ;;  %s2936_s24 = sadd.s32 1, %s2738_s12  }
  0x6a   : > { %3553 = sst [smem:[#allocation28_spill]] %s2936_s24  ;;  %s36_s25 = sadd.s32 1, %s2734_s11 }
  0x6b   : > { %s33_s26 = ssub.s32 %s2738_s12, %s2936_s24  ;;  %p43_p13 = scmp.ne.s32.totalorder %s2734_s11, %s2730_s10 }
  0x6c   : > { %p34_p0 = scmp.eq.s32.totalorder %s33_s26, 0  ;;  %p44_p2 = scmp.eq.s32.totalorder %s2738_s12, 0 }
  0x6d   : > { %p49_p5 = scmp.ne.s32.totalorder %s2730_s10, %s2726_s30  ;;  %p246_p7 = scmp.eq.s32.totalorder %s2831_s15, 1 }
  0x6e   : > { %s2948_s28 = scalar_select %p34_p0, %s2734_s11, %s36_s25  }
  0x6f   : > { %p45_p9 = por %p44_p2, %p43_p13  ;;  %p2952_p4 = por %p3526_p1, %p49_p5 }
  0x70   : > { %3554 = sst [smem:[#allocation29_spill]] %s2948_s28  ;;  %p2956_p10 = por %p246_p7, %p43_p13 }
  0x71   : > { %s3555_s21 = scalar_select %p2952_p4, 1, 0 }
  0x72   : > { %s3556_s29 = scalar_select %p2956_p10, 1, 0 }
  0x73   : > { %p252_p11 = scmp.eq.s32.totalorder %s1870_s23, 1  ;;  %p2231_p12 = scmp.lt.s32.totalorder %s2738_s12, 2 }
  0x74   : > { %s357_s13 = sand.u32 1, %s2738_s12   ;;  %s359_s14 = sand.u32 1, %s2734_s11  }
  0x75   : > { %p2962_p3 = por %p252_p11, %p49_p5  ;;  %s1937_s9 = sshll.u32 %s2738_s12, 8 }
  0x76   : > { %s1880_s22 = sshll.u32 %s359_s14, 4  ;;  %s3559_s0 = sld [smem:[#allocation31_spill]] }
  0x77   : > { %s3557_s18 = scalar_select %p2962_p3, 1, 0 }
  0x78   : > { %p2973_p13 = pnand %p2231_p12, %p45_p9  ;;  %s361_s20 = scalar_lea.vmem [#allocation2], %s1880_s22 }
  0x79   : > { %3558 = sst [smem:[#allocation30_spill]] %s3557_s18  ;;  %s368_s1 = sshll.u32 %s361_s20, 4  ;;  %s2979_s1 = int_to_ptr.vmem [resolvable:$true] %s368_s1 }
  0x7a   : > { %s3560_s23 = scalar_select %p2973_p13, 1, 0 }
  0x7b   : > { %s2977_s4 = sshll.u32 %s359_s14, 6  ;;  %s2981_s6 = scalar_lea.sflag [#allocation3], %s357_s13 }
  0x7c   : > { %s2971_s17 = scalar_lea.hbm %s3559_s0, %s1937_s9  ;;  %p3536_p2 = pneg %p2973_p13 }
  0x7d   : > { %s2476_s9 = scalar_lea.hbm %s2971_s17, 256  ;;  %s2481_s28 = scalar_lea.hbm %s3559_s0, 512 }
  0x7e   : > { %p2477_p0 = scmp.ne.s32.totalorder %s2971_s17, %s2476_s9  ;;  %p2482_p9 = scmp.lt.u32.totalorder %s2971_s17, %s3559_s0 }
  0x7f   : > { %p2483_p11 = scmp.lt.u32.totalorder %s2481_s28, %s2476_s9  ;;  %p2485_p1 = scmp.lt.u32.totalorder %s2476_s9, %s2971_s17 }
  0x80   : > { %p2479_p5 = pnand %p3536_p2, %p2477_p0 }
  0x81   : > { %p2484_p12 = por %p2483_p11, %p2482_p9 }
  0x82   : > { %p2480_p7 = pneg %p2479_p5 }
  0x83   : > { %p2486_p3 = por %p2485_p1, %p2484_p12 }
  0x85   : > { %p2487_p10 = pnand %p2486_p3, %p2480_p7 }
  0x87   : > { %2490 = shalt.err (!%p2487_p10)
}
  0x88   : > { %s2491_s13 = scalar_lea.vmem %s2979_s1, 256  ;;  %s2745_s14 = smov [#allocation2]  }
  0x89   : > { %p2492_p0 = scmp.ne.s32.totalorder %s2979_s1, %s2491_s13  ;;  %s2496_s25 = sshll.u32 %s2745_s14, 4  ;;  %s2497_s25 = int_to_ptr.vmem [resolvable:$false] %s2496_s25 }
  0x8a   : > { %s2498_s26 = scalar_lea.vmem %s2497_s25, 512  ;;  %p2499_p6 = scmp.lt.s32.totalorder %s2979_s1, %s2497_s25 }
  0x8b   : > { %p2494_p5 = pnand %p2492_p0, %p3536_p2  ;;  %p2500_p9 = scmp.lt.s32.totalorder %s2498_s26, %s2491_s13 }
  0x8d   : > { %p2495_p4 = pneg %p2494_p5  ;;  %p2501_p11 = por %p2500_p9, %p2499_p6 }
  0x8f   : > { %p2502_p1 = pnand %p2501_p11, %p2495_p4 }
  0x91   : > { %2505 = shalt.err (!%p2502_p1)
}
  0x92   : > { %s3561_s28 = smov 8   ;;  %s3562_s9 = smov 128  }
  0x93   : > { %2216 = dma.hbm_to_vmem [thread:$0]  (!%p2973_p13), %s2971_s17, 256, %s2979_s1, %s2981_s6, %s3562_s9, %s3562_s9, %s3561_s28  }
  0x94   : > { %s382_s22 = scalar_lea.vmem [#allocation7], %s2977_s4  ;;  %s2746_s14 = smov [#allocation8]  }
  0x95   : > { %s3013_s20 = sshll.u32 %s382_s22, 4  ;;  %s284_s25 = sshll.u32 %s2746_s14, 4  ;;  %s285_s25 = int_to_ptr.vmem [resolvable:$true] %s284_s25  ;;  %s3103_s20 = int_to_ptr.vmem [resolvable:$true] %s3013_s20 }
  0x96   : > { %s3563_s3 = sld [smem:[#allocation33_spill]] }
  0x9c   : > { %s2506_s0 = scalar_lea.hbm %s3563_s3, 512 }
  0x9d   : > { %p2507_p3 = scmp.ne.s32.totalorder %s3563_s3, %s2506_s0  ;;  %p2513_p10 = scmp.lt.u32.totalorder %s2506_s0, %s3563_s3 }
  0x9f   : > { %p2509_p6 = pnand %p2507_p3, %p2863_p8 }
  0xa1   : > { %p2510_p4 = pneg %p2509_p6 }
  0xa3   : > { %p2515_p7 = pnand %p2513_p10, %p2510_p4 }
  0xa5   : > { %2518 = shalt.err (!%p2515_p7)
}
  0xa6   : > { %s2519_s1 = scalar_lea.vmem %s285_s25, 512  ;;  %p2527_p9 = scmp.lt.s32.totalorder %s285_s25, %s285_s25 }
  0xa7   : > { %p2520_p12 = scmp.ne.s32.totalorder %s285_s25, %s2519_s1  ;;  %p2528_p11 = scmp.lt.s32.totalorder %s2519_s1, %s2519_s1 }
  0xa9   : > { %p2522_p0 = pnand %p2520_p12, %p2863_p8  ;;  %p2529_p1 = por %p2528_p11, %p2527_p9 }
  0xab   : > { %p2523_p5 = pneg %p2522_p0 }
  0xad   : > { %p2530_p2 = pnand %p2529_p1, %p2523_p5 }
  0xaf   : > { %2533 = shalt.err (!%p2530_p2)
}
  0xb0   : > { %p3564_p3 = scmp.ne.s32.totalorder %s3548_s19, 0  ;;  %s2747_s30 = smov [#allocation11]  }
  0xb1   : > { %s308_s11 = sshll.u32 %s2747_s30, 4  ;;  %s2748_s17 = smov [#allocation14]   ;;  %s309_s11 = int_to_ptr.vmem [resolvable:$true] %s308_s11 }
  0xb2   : > { %2197 = dma.hbm_to_vmem [thread:$0]  (!%p3564_p3), %s3563_s3, 512, %s285_s25, [#allocation6], %s3562_s9, %s3562_s9, %s3561_s28  }
  0xb3   : > { %s332_s24 = sshll.u32 %s2748_s17, 4  ;;  %s2534_s14 = scalar_lea.hbm %s3515_s5, 1024  ;;  %s333_s24 = int_to_ptr.vmem [resolvable:$true] %s332_s24 }
  0xb4   : > { %p2535_p2 = scmp.ne.s32.totalorder %s3515_s5, %s2534_s14  ;;  %p2541_p10 = scmp.lt.u32.totalorder %s2534_s14, %s3515_s5 }
  0xb6   : > { %p2537_p6 = pnand %p2535_p2, %p2863_p8 }
  0xb8   : > { %p2538_p4 = pneg %p2537_p6 }
  0xba   : > { %p2543_p7 = pnand %p2541_p10, %p2538_p4 }
  0xbc   : > { %2546 = shalt.err (!%p2543_p7)
}
  0xbd   : > { %s2547_s25 = scalar_lea.vmem %s309_s11, 1024  ;;  %p2555_p9 = scmp.lt.s32.totalorder %s309_s11, %s309_s11 }
  0xbe   : > { %p2548_p12 = scmp.ne.s32.totalorder %s309_s11, %s2547_s25  ;;  %p2556_p11 = scmp.lt.s32.totalorder %s2547_s25, %s2547_s25 }
  0xc0   : > { %p2550_p0 = pnand %p2548_p12, %p2863_p8  ;;  %p2557_p1 = por %p2556_p11, %p2555_p9 }
  0xc2   : > { %p2551_p5 = pneg %p2550_p0 }
  0xc4   : > { %p2558_p13 = pnand %p2557_p1, %p2551_p5 }
  0xc6   : > { %2561 = shalt.err (!%p2558_p13)
}
  0xc7   : > { %2203 = dma.hbm_to_vmem [thread:$0]  (!%p3564_p3), %s3515_s5, 1024, %s309_s11, [#allocation10], %s3562_s9, %s3562_s9, %s3561_s28  }
  0xc8   : > { %s2562_s22 = scalar_lea.hbm %s3517_s7, 1024 }
  0xc9   : > { %p2563_p2 = scmp.ne.s32.totalorder %s3517_s7, %s2562_s22  ;;  %p2569_p4 = scmp.lt.u32.totalorder %s2562_s22, %s3517_s7 }
  0xcb   : > { %p2565_p13 = pnand %p2563_p2, %p2863_p8 }
  0xcd   : > { %p2566_p6 = pneg %p2565_p13 }
  0xcf   : > { %p2571_p10 = pnand %p2569_p4, %p2566_p6 }
  0xd1   : > { %2574 = shalt.err (!%p2571_p10)
}
  0xd2   : > { %s2575_s4 = scalar_lea.vmem %s333_s24, 1024  ;;  %p2583_p5 = scmp.lt.s32.totalorder %s333_s24, %s333_s24 }
  0xd3   : > { %p2576_p7 = scmp.ne.s32.totalorder %s333_s24, %s2575_s4  ;;  %p2584_p9 = scmp.lt.s32.totalorder %s2575_s4, %s2575_s4 }
  0xd5   : > { %p2578_p12 = pnand %p2576_p7, %p2863_p8  ;;  %p2585_p11 = por %p2584_p9, %p2583_p5 }
  0xd7   : > { %p2579_p0 = pneg %p2578_p12 }
  0xd9   : > { %p2586_p1 = pnand %p2585_p11, %p2579_p0 }
  0xdb   : > { %2589 = shalt.err (!%p2586_p1)
}
  0xdc   : > { %2209 = dma.hbm_to_vmem [thread:$0]  (!%p3564_p3), %s3517_s7, 1024, %s333_s24, [#allocation13], %s3562_s9, %s3562_s9, %s3561_s28  }
  0xdd   : > { %s2749_s0 = smov [#allocation15]   ;;  %s1938_s17 = sshll.u32 %s2738_s12, 10 }
  0xde   : > { %s346_s30 = sshll.u32 %s2749_s0, 4  ;;  %s3082_s14 = scalar_lea.hbm %s3512_s2, %s1938_s17  ;;  %s347_s30 = int_to_ptr.vmem [resolvable:$true] %s346_s30 }
  0xdf   : > { %s2590_s1 = scalar_lea.hbm %s3518_s8, 16 }
  0xe0   : > { %p2591_p2 = scmp.ne.s32.totalorder %s3518_s8, %s2590_s1  ;;  %p2597_p4 = scmp.lt.u32.totalorder %s2590_s1, %s3518_s8 }
  0xe2   : > { %p2593_p13 = pnand %p2591_p2, %p2863_p8 }
  0xe4   : > { %p2594_p6 = pneg %p2593_p13 }
  0xe6   : > { %p2599_p10 = pnand %p2597_p4, %p2594_p6 }
  0xe8   : > { %2602 = shalt.err (!%p2599_p10)
}
  0xe9   : > { %s2603_s25 = scalar_lea.vmem %s347_s30, 16  ;;  %s2610_s0 = scalar_lea.vmem %s347_s30, 32 }
  0xea   : > { %p2604_p7 = scmp.ne.s32.totalorder %s347_s30, %s2603_s25  ;;  %p2611_p5 = scmp.lt.s32.totalorder %s347_s30, %s347_s30 }
  0xeb   : > { %p2612_p9 = scmp.lt.s32.totalorder %s2610_s0, %s2603_s25 }
  0xec   : > { %p2606_p12 = pnand %p2604_p7, %p2863_p8 }
  0xed   : > { %p2613_p11 = por %p2612_p9, %p2611_p5 }
  0xee   : > { %p2607_p0 = pneg %p2606_p12 }
  0xf0   : > { %p2614_p1 = pnand %p2613_p11, %p2607_p0 }
  0xf2   : > { %2617 = shalt.err (!%p2614_p1)
}
  0xf3   : > { %2212 = dma.hbm_to_vmem [thread:$0]  (!%p3564_p3), %s3518_s8, 16, %s347_s30, [#allocation16]  }
  0xf4   : > { %s2618_s27 = scalar_lea.hbm %s3082_s14, 1024  ;;  %p3565_p2 = scmp.ne.s32.totalorder %s3560_s23, 0 }
  0xf5   : > { %p2619_p8 = scmp.ne.s32.totalorder %s3082_s14, %s2618_s27  ;;  %s2623_s22 = scalar_lea.hbm %s3512_s2, 2048 }
  0xf6   : > { %p3566_p13 = pneg %p3565_p2  ;;  %p2624_p10 = scmp.lt.u32.totalorder %s3082_s14, %s3512_s2 }
  0xf7   : > { %p2625_p7 = scmp.lt.u32.totalorder %s2623_s22, %s2618_s27  ;;  %p2627_p0 = scmp.lt.u32.totalorder %s2618_s27, %s3082_s14 }
  0xf8   : > { %p2621_p6 = pnand %p2619_p8, %p3566_p13 }
  0xf9   : > { %p2626_p12 = por %p2625_p7, %p2624_p10 }
  0xfa   : > { %p2622_p4 = pneg %p2621_p6 }
  0xfb   : > { %p2628_p3 = por %p2627_p0, %p2626_p12 }
  0xfd   : > { %p2629_p5 = pnand %p2628_p3, %p2622_p4 }
  0xff   : > { %2632 = shalt.err (!%p2629_p5)
}
 0x100   : > { %s2633_s30 = scalar_lea.vmem %s3103_s20, 1024  ;;  %p3567_p11 = pmov %p3566_p13 }
 0x101   : > { %p2634_p9 = scmp.ne.s32.totalorder %s3103_s20, %s2633_s30  ;;  %s2750_s1 = smov [#allocation7]  }
 0x102   : > { %s2638_s4 = sshll.u32 %s2750_s1, 4  ;;  %s2639_s4 = int_to_ptr.vmem [resolvable:$false] %s2638_s4 }
 0x103   : > { %p2636_p1 = pnand %p2634_p9, %p3567_p11  ;;  %s2640_s24 = scalar_lea.vmem %s2639_s4, 2048 }
 0x104   : > { %p2641_p13 = scmp.lt.s32.totalorder %s3103_s20, %s2639_s4  ;;  %p2642_p6 = scmp.lt.s32.totalorder %s2640_s24, %s2633_s30 }
 0x105   : > { %p2637_p8 = pneg %p2636_p1 }
 0x106   : > { %p2643_p10 = por %p2642_p6, %p2641_p13 }
 0x108   : > { %p2644_p7 = pnand %p2643_p10, %p2637_p8 }
 0x10a   : > { %2647 = shalt.err (!%p2644_p7)
}
 0x10b   : > { %2219 = dma.hbm_to_vmem [thread:$0]  (!%p3565_p2), %s3082_s14, 1024, %s3103_s20, %s2981_s6, %s3562_s9, %s3562_s9, %s3561_s28  }
 0x10c   : > { %p3568_p4 = scmp.ne.s32.totalorder %s3547_s16, 0 }
 0x10d   : > { %s403_s11 = sand.u32 (!%p3568_p4), 1, %s2831_s15   ;;  %s3136_s25 = sand.u32 (!%p3568_p4), 1, %s2730_s10  }
 0x10e   : > { %401 = sbr.rel (%p3568_p4) target bundleno = 1622 (0x656), region = 56  ;;  %s1887_s0 = sshll.u32 (!%p3568_p4), %s3136_s25, 4 }
 0x10f   : > { %s404_s3 = scalar_lea.sflag (!%p3568_p4), [#allocation3], %s403_s11  ;;  %s3139_s23 = scalar_lea.vmem (!%p3568_p4), [#allocation2], %s1887_s0 }
 0x110   : > { %p3569_p12 = scmp.ne.s32.totalorder (!%p3568_p4), %s3555_s21, 0 }
 0x115   : > { %2693 = dma.done.wait (%p3569_p12), %s404_s3, 256  }
 0x116   : > { %2695 = vsyncadd (%p3569_p12), %s404_s3, 4294967040  ;;  %p3570_p2 = scmp.eq.s32.totalorder %s2831_s15, 0 }
 0x118   : > { %2697 = dma.done.wait (%p3570_p2), [#allocation6], 2048   ;;  %p3571_p0 = pmov %p3570_p2 }
 0x119   : > { %s1889_s6 = sshll.u32 %s3136_s25, 6 }
 0x11a   : > { %2699 = vsyncadd (%p3571_p0), [#allocation6], 4294965248  ;;  %s3152_s16 = scalar_lea.vmem [#allocation7], %s1889_s6 }
 0x11b   : > { %2701 = dma.done.wait (%p3569_p12), %s404_s3, 1024  }
 0x11c   : > { %2703 = vsyncadd (%p3569_p12), %s404_s3, 4294966272  ;;  %p3572_p3 = pmov %p3571_p0 }
 0x11d   : > { %p3573_p5 = pmov %p3571_p0 }
 0x11e   : > { %2705 = dma.done.wait (%p3572_p3), [#allocation6], 512  }
 0x11f   : > { %2707 = vsyncadd (%p3573_p5), [#allocation6], 4294966784  ;;  %p3574_p9 = pmov %p3571_p0 }
 0x120   : > { %p3575_p11 = pmov %p3571_p0 }
 0x121   : > { %2709 = dma.done.wait (%p3574_p9), [#allocation10], 1056  }
 0x122   : > { %2711 = vsyncadd (%p3575_p11), [#allocation10], 4294966240  ;;  %p3576_p1 = pmov %p3571_p0 }
 0x123   : > { %p3577_p8 = pmov %p3571_p0 }
 0x124   : > { %2713 = dma.done.wait (%p3576_p1), [#allocation13], 1040  }
 0x125   : > { %2715 = vsyncadd (%p3577_p8), [#allocation13], 4294966256  ;;  %p3578_p13 = pmov %p3571_p0 }
 0x126   : > { %p3579_p6 = pmov %p3571_p0 }
 0x127   : > { %2717 = dma.done.wait (%p3578_p13), [#allocation16], 16  }
 0x128   : > { %2719 = vsyncadd (%p3579_p6), [#allocation16], 4294967280  ;;  %v488_v0 = vld [vmem:[#allocation8] sm:$0xff]  ;;  %v489_v1 = vld [vmem:[#allocation8 + $0x8] sm:$0xff]  ;;  %vm518_vm0 = vcmask 261120   ;;  %v2751_v54 = vmov 0.0  }
 0x129   : > { %v490_v2 = vld [vmem:[#allocation8 + $0x10] sm:$0xff]  ;;  %v492_v3 = vpack.c.bf16 %v489_v1, %v488_v0  ;;  %v491_v4 = vld [vmem:[#allocation8 + $0x18] sm:$0xff]  ;;  %v640_v5 = vld [vmem:[%s3152_s16] sm:$0xff]  ;;  %vm2752_vm1 = vmmov 0   ;;  %v2753_v55 = vmov 0   ;;  %vm739_vm2 = vcmask 523264  }
 0x12a   : > { %v641_v6 = vld [vmem:[%s3152_s16 + $0x8] sm:$0xff]  ;;  %v493_v7 = vpack.c.bf16 %v491_v4, %v490_v2  ;;  %v642_v9 = vld [vmem:[%s3152_s16 + $0x10] sm:$0xff]  ;;  %v643_v10 = vld [vmem:[%s3152_s16 + $0x18] sm:$0xff]  ;;  %2289 = vset.pattern.permute.xlu1 %v2753_v55  ;;  %2290 = vset.pattern.permute.xlu0 %v2753_v55  ;;  %s2755_s21 = smov 96   ;;  %s483_s28 = scalar_lea.vmem [#allocation17], %s1889_s6 }
 0x12b   : > { %v648_v8 = vpack.c.bf16 %v641_v6, %v640_v5  ;;  %2029 = vmatprep.subr.bf16.mxu1 %v492_v3  ;;  %2009 = vmatprep.subr.bf16.mxu0 %v492_v3  ;;  %v644_v11 = vld [vmem:[%s3152_s16 + $0x20] sm:$0xff]  ;;  %v495_v13 = vld [vmem:[#allocation5 + $0x8] sm:$0xff]  ;;  %v496_v16 = vld [vmem:[#allocation5 + $0x10] sm:$0xff]  ;;  %v649_v20 = vpack.c.bf16 %v643_v10, %v642_v9  ;;  %s1939_s9 = sshll.u32 %s2831_s15, 10  ;;  %s1710_s20 = sshll.u32 %s483_s28, 4  ;;  %s3463_s20 = int_to_ptr.vmem [resolvable:$true] %s1710_s20 }
 0x12c   : > { %2030 = vmatpush3.bf16.msra.mxu1 %v492_v3  ;;  %v494_v12 = vld [vmem:[#allocation5] sm:$0xff]  ;;  %v645_v14 = vld [vmem:[%s3152_s16 + $0x28] sm:$0xff]  ;;  %2010 = vmatpush3.bf16.msra.mxu0 %v492_v3  ;;  %v497_v17 = vld [vmem:[#allocation5 + $0x18] sm:$0xff]  ;;  %s3580_s27 = sld [smem:[#allocation36_spill]]  ;;  %s1697_s15 = scalar_lea.sflag [#allocation4], %s3136_s25 }
 0x12d   : > { %2033 = vmatprep.mubr.msk.bf16.mxu1 %vm518_vm0, %v648_v8  ;;  %2031 = vmatprep.subr.bf16.mxu1 %v493_v7  ;;  %v510_v15 = vpack.c.bf16 %v495_v13, %v494_v12  ;;  %v498_v18 = vld [vmem:[#allocation5 + $0x20] sm:$0xff]  ;;  %v499_v19 = vld [vmem:[#allocation5 + $0x28] sm:$0xff]  ;;  %v650_v21 = vpack.c.bf16 %v645_v14, %v644_v11  ;;  %v511_v22 = vpack.c.bf16 %v497_v17, %v496_v16  ;;  %v813_v27 = vld [vmem:[#allocation11 + $0x10] sm:$0xff]  ;;  %s2648_s19 = scalar_lea.vmem %s3463_s20, 1024  ;;  %p3581_p7 = scmp.ne.s32.totalorder %s3556_s29, 0 }
 0x12e   : > { %2011 = vmatprep.subr.bf16.mxu0 %v493_v7  ;;  %v512_v23 = vpack.c.bf16 %v499_v19, %v498_v18  ;;  %v811_v24 = vld [vmem:[#allocation11] sm:$0xff]  ;;  %v812_v25 = vld [vmem:[#allocation11 + $0x8] sm:$0xff]  ;;  %v814_v28 = vld [vmem:[#allocation11 + $0x18] sm:$0xff]  ;;  %p2649_p10 = scmp.ne.s32.totalorder %s3463_s20, %s2648_s19  ;;  %s2757_s22 = smov [#allocation17]  }
 0x12f   : > { %2013 = vmatprep.mubr.msk.bf16.mxu0 %vm518_vm0, %v510_v15  ;;  %v819_v26 = vpack.c.bf16 %v812_v25, %v811_v24  ;;  %v646_v29 = vld [vmem:[%s3152_s16 + $0x30] sm:$0xff]  ;;  %v820_v30 = vpack.c.bf16 %v814_v28, %v813_v27  ;;  %v647_v31 = vld [vmem:[%s3152_s16 + $0x38] sm:$0xff]  ;;  %v815_v32 = vld [vmem:[#allocation11 + $0x20] sm:$0xff]  ;;  %s2652_s13 = sshll.u32 %s2757_s22, 4  ;;  %s2653_s13 = int_to_ptr.vmem [resolvable:$false] %s2652_s13 }
 0x130   : > { %2032 = vmatpush3.bf16.msra.mxu1 %v493_v7  ;;  %2012 = vmatpush3.bf16.msra.mxu0 %v493_v7  ;;  %v816_v33 = vld [vmem:[#allocation11 + $0x28] sm:$0xff]  ;;  %v501_v35 = vld [vmem:[#allocation5 + $0x38] sm:$0xff]  ;;  %v502_v36 = vld [vmem:[#allocation5 + $0x40] sm:$0xff]  ;;  %v651_v38 = vpack.c.bf16 %v647_v31, %v646_v29  ;;  %p2650_p4 = pnand %p2649_p10, %p3581_p7  ;;  %s2654_s26 = scalar_lea.vmem %s2653_s13, 2048 }
 0x131   : > { %v500_v34 = vld [vmem:[#allocation5 + $0x30] sm:$0xff]  ;;  %2061 = vmatprep.subr.bf16.mxu1 %v819_v26  ;;  %v503_v37 = vld [vmem:[#allocation5 + $0x48] sm:$0xff]  ;;  %v821_v39 = vpack.c.bf16 %v816_v33, %v815_v32  ;;  %v505_v43 = vld [vmem:[#allocation5 + $0x58] sm:$0xff]  ;;  %2041 = vmatprep.subr.bf16.mxu0 %v2751_v54  ;;  %p2655_p2 = scmp.lt.s32.totalorder %s3463_s20, %s2653_s13  ;;  %p2656_p0 = scmp.lt.s32.totalorder %s2654_s26, %s2648_s19 }
 0x132   : > { %v513_v40 = vpack.c.bf16 %v501_v35, %v500_v34  ;;  %v514_v41 = vpack.c.bf16 %v503_v37, %v502_v36  ;;  %v504_v42 = vld [vmem:[#allocation5 + $0x50] sm:$0xff]  ;;  %v506_v44 = vld [vmem:[#allocation5 + $0x60] sm:$0xff]  ;;  %v507_v45 = vld [vmem:[#allocation5 + $0x68] sm:$0xff]  ;;  %s3461_s18 = scalar_lea.hbm %s3580_s27, %s1939_s9  ;;  %p2651_p12 = pneg %p2650_p4 }
 0x133   : > { %2034 = vmatmul.mubr.msk.bf16.vlgmr.msra.gmra.mrb[0].mxu1 %vm518_vm0, %v649_v20  ;;  %2014 = vmatmul.mubr.msk.bf16.vlgmr.msra.gmra.mrb[0].mxu0 %vm518_vm0, %v511_v22  ;;  %v515_v46 = vpack.c.bf16 %v505_v43, %v504_v42  ;;  %v516_v47 = vpack.c.bf16 %v507_v45, %v506_v44  ;;  %v508_v48 = vld [vmem:[#allocation5 + $0x70] sm:$0xff]  ;;  %v509_v49 = vld [vmem:[#allocation5 + $0x78] sm:$0xff]  ;;  %v737_v36 = vld [vmem:[#allocation9] sm:$0x3]  ;;  %v2754_v42 = vmov 1   ;;  %p2657_p3 = por %p2656_p0, %p2655_p2 }
 0x134   : > { %2037 = vmatprep.mubr.msk.bf16.mxu1 %vm518_vm0, %v650_v21  ;;  %2017 = vmatprep.mubr.msk.bf16.mxu0 %vm518_vm0, %v512_v23  ;;  %v517_v50 = vpack.c.bf16 %v509_v49, %v508_v48  ;;  %v817_v51 = vld [vmem:[#allocation11 + $0x30] sm:$0xff]  ;;  %v818_v52 = vld [vmem:[#allocation11 + $0x38] sm:$0xff]  ;;  %v738_v37 = vpack.c.bf16 %v737_v36, %v737_v36 }
 0x135   : > { %2062 = vmatpush3.bf16.msra.mxu1 %v819_v26  ;;  %v822_v53 = vpack.c.bf16 %v818_v52, %v817_v51  ;;  %v974_v51 = vlaneseq  ;;  %p2658_p5 = pnand %p2657_p3, %p2651_p12 }
 0x136   : > { %2063 = vmatprep.subr.bf16.mxu1 %v820_v30 }
 0x137   : > { %v975_v52 = vshrl.u32 %v974_v51, 7 }
 0x139   : > { %2064 = vmatpush3.bf16.msra.mxu1 %v820_v30 }
 0x13a   : > { %2065 = vmatprep.subr.bf16.mxu1 %v821_v39 }
 0x13b   : > { %2038 = vmatmul.mubr.msk.bf16.gmra.mrb[4].mxu1 %vm518_vm0, %v651_v38  ;;  %2018 = vmatmul.mubr.msk.bf16.gmra.mrb[4].mxu0 %vm518_vm0, %v513_v40 }
 0x13c   : > { %2021 = vmatprep.mubr.msk.bf16.mxu0 %vm518_vm0, %v514_v41 }
 0x13d   : > { %2066 = vmatpush3.bf16.msra.mxu1 %v821_v39 }
 0x13e   : > { %2067 = vmatprep.subr.bf16.mxu1 %v822_v53 }
 0x141   : > { %2068 = vmatpush3.bf16.msra.mxu1 %v822_v53  ;;  %v900_v53 = vld [vmem:[%s3139_s23] sm:$0xff] }
 0x143   : > { %2022 = vmatmul.mubr.msk.bf16.gmra.mrb[8].mxu0 %vm518_vm0, %v515_v46 }
 0x144   : > { %2025 = vmatprep.mubr.msk.bf16.mxu0 %vm518_vm0, %v516_v47 }
 0x14b   : > { %2026 = vmatmul.mubr.msk.bf16.gmra.mrb[12].mxu0 %vm518_vm0, %v517_v50 }
 0x14c   : > { %2057 = vmatprep.mubr.msk.bf16.mxu0 %vm2752_vm1, %v2751_v54 }
 0x206   : > { %v2035_v56 = vpop.f32.mrb[0].mxu1  ;;  %v2015_v58 = vpop.f32.mrb[0].mxu0 }
 0x207   : > { %v698_v57 = vpop.f32.mrb[1].mxu1  ;;  %v577_v60 = vpop.f32.mrb[1].mxu0 }
 0x208   : > { %v2036_v59 = vpop.f32.mrb[2].mxu1  ;;  %v2016_v63 = vpop.f32.mrb[2].mxu0 }
 0x209   : > { %v808_v61 = vpack.c.bf16 %v2036_v59, %v2035_v56  ;;  %v701_v62 = vpop.f32.mrb[3].mxu1  ;;  %v3198_v1 = vpack.c.bf16 %v2016_v63, %v2015_v58  ;;  %v580_v2 = vpop.f32.mrb[3].mxu0  ;;  %v976_v56 = vsub.s32 0, %v975_v52  ;;  %v902_v58 = vunpack.c.0.s8 %v900_v53 }
 0x20a   : > { %v807_v0 = vpack.c.bf16 %v701_v62, %v698_v57  ;;  %v3200_v3 = vpack.c.bf16 %v580_v2, %v577_v60  ;;  %v1226_v59 = vsub.s32 1, %v975_v52  ;;  %v2756_v2 = vmov -1e+30  }
 0x20b   : > { %v747_v16 = vsel %vm739_vm2, %v3198_v1, 0  ;;  %v910_v63 = vcvt.s32.f32 %v902_v58 }
 0x20c   : > { %2069 = vmatprep.mubr.msk.bf16.mxu1 %vm739_vm2, %v807_v0  ;;  %v744_v4 = vsel %vm739_vm2, %v3200_v3, 0  ;;  %2077 = vmatprep.subr.bf16.mxu1 %v3200_v3 }
 0x20d   : > { %2070 = vmatmul.mubr.msk.bf16.vlgmr.msra.gmra.mrb[8].mxu1 %vm739_vm2, %v808_v61  ;;  %2042 = vmatpush3.bf16.xpose.msra.mxu0 %v744_v4  ;;  %vm918_vm5 = vcmp.gt.f32.partialorder %v910_v63, 0.0 }
 0x20e   : > { %v2039_v5 = vpop.f32.mrb[4].mxu1  ;;  %2078 = vmatpush3.bf16.msra.mxu1 %v3200_v3  ;;  %2043 = vmatprep.subr.bf16.mxu0 %v2751_v54  ;;  %v2019_v7 = vpop.f32.mrb[4].mxu0 }
 0x20f   : > { %v714_v6 = vpop.f32.mrb[5].mxu1  ;;  %2079 = vmatprep.subr.bf16.mxu1 %v3198_v1  ;;  %v593_v9 = vpop.f32.mrb[5].mxu0 }
 0x210   : > { %v2040_v8 = vpop.f32.mrb[6].mxu1  ;;  %v2020_v12 = vpop.f32.mrb[6].mxu0 }
 0x211   : > { %v810_v10 = vpack.c.bf16 %v2040_v8, %v2039_v5  ;;  %v717_v11 = vpop.f32.mrb[7].mxu1  ;;  %v3211_v14 = vpack.c.bf16 %v2020_v12, %v2019_v7  ;;  %v596_v15 = vpop.f32.mrb[7].mxu0 }
 0x212   : > { %v809_v13 = vpack.c.bf16 %v717_v11, %v714_v6  ;;  %2080 = vmatpush3.bf16.msra.mxu1 %v3198_v1  ;;  %v3215_v17 = vpack.c.bf16 %v596_v15, %v593_v9 }
 0x213   : > { %v753_v30 = vsel %vm739_vm2, %v3211_v14, 0 }
 0x214   : > { %2073 = vmatprep.mubr.msk.bf16.mxu1 %vm739_vm2, %v809_v13  ;;  %2081 = vmatprep.subr.bf16.mxu1 %v3215_v17  ;;  %v750_v23 = vsel %vm739_vm2, %v3215_v17, 0 }
 0x215   : > { %2074 = vmatmul.mubr.msk.bf16.gmra.mrb[12].mxu1 %vm739_vm2, %v810_v10  ;;  %2044 = vmatpush3.bf16.xpose.msra.mxu0 %v747_v16  ;;  %v905_v10 = vunpack.c.3.s8 %v900_v53  ;;  %v926_v16 = vsel %vm918_vm5, 0.0, %v2756_v2 }
 0x216   : > { %2082 = vmatpush3.bf16.msra.mxu1 %v3215_v17  ;;  %2045 = vmatprep.subr.bf16.mxu0 %v2751_v54  ;;  %v2023_v18 = vpop.f32.mrb[8].mxu0 }
 0x217   : > { %2083 = vmatprep.subr.bf16.mxu1 %v3211_v14  ;;  %v609_v19 = vpop.f32.mrb[9].mxu0 }
 0x218   : > { %v2024_v20 = vpop.f32.mrb[10].mxu0 }
 0x219   : > { %v3224_v21 = vpack.c.bf16 %v2024_v20, %v2023_v18  ;;  %v612_v22 = vpop.f32.mrb[11].mxu0  ;;  %v903_v18 = vunpack.c.1.s8 %v900_v53 }
 0x21a   : > { %2084 = vmatpush3.bf16.msra.mxu1 %v3211_v14  ;;  %v3228_v24 = vpack.c.bf16 %v612_v22, %v609_v19  ;;  %v3281_v19 = vld [vmem:[%s3139_s23 + $0x8] sm:$0xff] }
 0x21b   : > { %v759_v33 = vsel %vm739_vm2, %v3224_v21, 0 }
 0x21c   : > { %2085 = vmatprep.subr.bf16.mxu1 %v3228_v24  ;;  %v756_v32 = vsel %vm739_vm2, %v3228_v24, 0 }
 0x21d   : > { %2046 = vmatpush3.bf16.xpose.msra.mxu0 %v750_v23  ;;  %v913_v23 = vcvt.s32.f32 %v905_v10 }
 0x21e   : > { %2086 = vmatpush3.bf16.msra.mxu1 %v3228_v24  ;;  %2047 = vmatprep.subr.bf16.mxu0 %v2751_v54  ;;  %v2027_v25 = vpop.f32.mrb[12].mxu0 }
 0x21f   : > { %2087 = vmatprep.subr.bf16.mxu1 %v3224_v21  ;;  %v625_v26 = vpop.f32.mrb[13].mxu0  ;;  %vm921_vm9 = vcmp.gt.f32.partialorder %v913_v23, 0.0 }
 0x220   : > { %v2028_v27 = vpop.f32.mrb[14].mxu0 }
 0x221   : > { %v3235_v28 = vpack.c.bf16 %v2028_v27, %v2027_v25  ;;  %v628_v29 = vpop.f32.mrb[15].mxu0  ;;  %v906_v25 = vunpack.c.0.s8 %v3281_v19 }
 0x222   : > { %2088 = vmatpush3.bf16.msra.mxu1 %v3224_v21  ;;  %v3239_v31 = vpack.c.bf16 %v628_v29, %v625_v26 }
 0x223   : > { %v765_v35 = vsel %vm739_vm2, %v3235_v28, 0 }
 0x224   : > { %2089 = vmatprep.subr.bf16.mxu1 %v3239_v31  ;;  %v762_v34 = vsel %vm739_vm2, %v3239_v31, 0 }
 0x225   : > { %2048 = vmatpush3.bf16.xpose.msra.mxu0 %v753_v30 }
 0x226   : > { %2090 = vmatpush3.bf16.msra.mxu1 %v3239_v31  ;;  %2049 = vmatprep.subr.bf16.mxu0 %v2751_v54 }
 0x227   : > { %2091 = vmatprep.subr.bf16.mxu1 %v3235_v28 }
 0x22a   : > { %2092 = vmatpush3.bf16.msra.mxu1 %v3235_v28 }
 0x22d   : > { %2050 = vmatpush3.bf16.xpose.msra.mxu0 %v756_v32 }
 0x22e   : > { %2051 = vmatprep.subr.bf16.mxu0 %v2751_v54 }
 0x235   : > { %2052 = vmatpush3.bf16.xpose.msra.mxu0 %v759_v33 }
 0x236   : > { %2053 = vmatprep.subr.bf16.mxu0 %v2751_v54 }
 0x23d   : > { %2054 = vmatpush3.bf16.xpose.msra.mxu0 %v762_v34  ;;  %v911_v34 = vcvt.s32.f32 %v903_v18 }
 0x23e   : > { %2055 = vmatprep.subr.bf16.mxu0 %v2751_v54  ;;  %v904_v54 = vunpack.c.2.s8 %v900_v53 }
 0x23f   : > { %vm919_vm11 = vcmp.gt.f32.partialorder %v911_v34, 0.0 }
 0x240   : > { %v912_v57 = vcvt.s32.f32 %v904_v54  ;;  %v909_v54 = vunpack.c.3.s8 %v3281_v19 }
 0x242   : > { %vm920_vm3 = vcmp.gt.f32.partialorder %v912_v57, 0.0 }
 0x245   : > { %2056 = vmatpush3.bf16.xpose.msra.mxu0 %v765_v35 }
 0x24c   : > { %2058 = vmatmul.mubr.msk.bf16.vlgmr.msra.gmra.mrb[16].mxu0 %vm739_vm2, %v738_v37 }
 0x2e0   : > { %v2071_v38 = vpop.f32.mrb[8].mxu1 }
 0x2e1   : > { %946 = vperm.xlu1 %2289, %v2071_v38   ;;  %v869_v39 = vpop.f32.mrb[9].mxu1 }
 0x2e2   : > { %936 = vperm.xlu0 %2290, %v869_v39   ;;  %v2072_v40 = vpop.f32.mrb[10].mxu1 }
 0x2e3   : > { %v872_v41 = vpop.f32.mrb[11].mxu1 }
 0x2e5   : > { %951 = vperm.xlu1 %2289, %v2072_v40  }
 0x2e6   : > { %2291 = vset.pattern.permute.xlu0 %v2754_v42 }
 0x2e7   : > { %1193 = vperm.xlu0 %2291, %v869_v39   ;;  %v914_v39 = vcvt.s32.f32 %v906_v25 }
 0x2e8   : > { %v2075_v43 = vpop.f32.mrb[12].mxu1 }
 0x2e9   : > { %2292 = vset.pattern.permute.xlu1 %v2754_v42  ;;  %v885_v44 = vpop.f32.mrb[13].mxu1  ;;  %vm922_vm12 = vcmp.gt.f32.partialorder %v914_v39, 0.0 }
 0x2ea   : > { %1201 = vperm.xlu1 %2292, %v2071_v38   ;;  %v2076_v45 = vpop.f32.mrb[14].mxu1 }
 0x2eb   : > { %1336 = vrot.lane.b32.xlu0 %v3200_v3, %s2755_s21  ;;  %v888_v46 = vpop.f32.mrb[15].mxu1  ;;  %v928_v3 = vsel %vm920_vm3, 0.0, %v2756_v2 }
 0x2ee   : > { %1197 = vperm.xlu1 %2292, %v872_v41  }
 0x2ef   : > { %1205 = vperm.xlu0 %2291, %v2072_v40  }
 0x2f2   : > { %1217 = vperm.xlu1 %2292, %v2075_v43  }
 0x2f3   : > { %2293 = vset.pattern.permute.xlu0 %v2753_v55 }
 0x2f4   : > { %941 = vperm.xlu0 %2293, %v872_v41   ;;  %v908_v41 = vunpack.c.2.s8 %v3281_v19 }
 0x2f6   : > { %1209 = vperm.xlu1 %2292, %v885_v44   ;;  %v916_v51 = vcvt.s32.f32 %v908_v41 }
 0x2f8   : > { %966 = vperm.xlu0 %2293, %v2075_v43   ;;  %vm924_vm2 = vcmp.gt.f32.partialorder %v916_v51, 0.0 }
 0x2fa   : > { %2294 = vset.pattern.permute.xlu1 %v2753_v55 }
 0x2fb   : > { %971 = vperm.xlu1 %2294, %v2076_v45  }
 0x2fc   : > { %956 = vperm.xlu0 %2293, %v885_v44  }
 0x2ff   : > { %961 = vperm.xlu1 %2294, %v888_v46  }
 0x300   : > { %2295 = vset.pattern.permute.xlu0 %v2754_v42 }
 0x301   : > { %1221 = vperm.xlu0 %2295, %v2076_v45   ;;  %v929_v45 = vsel %vm921_vm9, 0.0, %v2756_v2 }
 0x303   : > { %1338 = vrot.lane.b32.xlu1 %v3198_v1, %s2755_s21 }
 0x305   : > { %1213 = vperm.xlu0 %2295, %v888_v46  }
 0x31f   : > { %v801_v47 = vpop.f32.mrb[16].mxu0 }
 0x320   : > { %v2059_v48 = vpop.f32.mrb[17].mxu0  ;;  %v3265_v55 = vrot.slane %v801_v47, %v976_v56  ;;  %v3268_v0 = vrot.slane %v801_v47, %v1226_v59 }
 0x321   : > { %v804_v49 = vpop.f32.mrb[18].mxu0 }
 0x322   : > { %v2060_v50 = vpop.f32.mrb[19].mxu0 }
 0x323   : > { %v927_v50 = vsel %vm919_vm11, 0.0, %v2756_v2 }
 0x360   : > { %v947_v60 = vpop.permute.xlu1 %946 }
 0x361   : > { %v980_v61 = vadd.f32 %v3265_v55, %v947_v60  ;;  %v937_v62 = vpop.permute.xlu0 %936  ;;  %v930_v60 = vsel %vm922_vm12, 0.0, %v2756_v2 }
 0x362   : > { %v978_v8 = vadd.f32 %v3265_v55, %v937_v62 }
 0x363   : > { %v996_v1 = vmul.f32 0.2, %v980_v61  ;;  %vm988_vm4 = vcmp.gt.f32.partialorder %v980_v61, 0.0 }
 0x364   : > { %v952_v4 = vpop.permute.xlu1 %951  ;;  %v994_v20 = vmul.f32 0.2, %v978_v8  ;;  %vm986_vm8 = vcmp.gt.f32.partialorder %v978_v8, 0.0 }
 0x365   : > { %v1004_v5 = vsel %vm988_vm4, %v980_v61, %v996_v1  ;;  %v981_v26 = vadd.f32 %v3265_v55, %v952_v4 }
 0x366   : > { %v1194_v6 = vpop.permute.xlu0 %1193  ;;  %v3271_v7 = vadd.f32 %v1004_v5, %v928_v3  ;;  %v1002_v38 = vsel %vm986_vm8, %v978_v8, %v994_v20  ;;  %v917_v8 = vcvt.s32.f32 %v909_v54  ;;  %v932_v20 = vsel %vm924_vm2, 0.0, %v2756_v2 }
 0x367   : > { %v1228_v9 = vadd.f32 %v3268_v0, %v1194_v6  ;;  %v997_v36 = vmul.f32 0.2, %v981_v26  ;;  %vm989_vm10 = vcmp.gt.f32.partialorder %v981_v26, 0.0  ;;  %v3295_v44 = vadd.f32 %v1002_v38, %v926_v16 }
 0x368   : > { %1022 = vmax.xlane.f32.xlu0 %v3271_v7  ;;  %vm925_vm5 = vcmp.gt.f32.partialorder %v917_v8, 0.0 }
 0x369   : > { %v1244_v11 = vmul.f32 0.2, %v1228_v9  ;;  %v1202_v12 = vpop.permute.xlu1 %1201  ;;  %vm1236_vm6 = vcmp.gt.f32.partialorder %v1228_v9, 0.0  ;;  %v1005_v48 = vsel %vm989_vm10, %v981_v26, %v997_v36  ;;  %v933_v38 = vsel %vm925_vm5, 0.0, %v2756_v2 }
 0x36a   : > { %v1230_v13 = vadd.f32 %v3268_v0, %v1202_v12  ;;  %v3277_v15 = vpop.permute.xlu0 %1336  ;;  %v3306_v59 = vadd.f32 %v1005_v48, %v929_v45 }
 0x36b   : > { %2101 = vmatprep.subr.bf16.mxu1 %v3277_v15  ;;  %v1252_v22 = vsel %vm1236_vm6, %v1228_v9, %v1244_v11 }
 0x36c   : > { %v1246_v27 = vmul.f32 0.2, %v1230_v13  ;;  %v3286_v29 = vadd.f32 %v1252_v22, %v926_v16  ;;  %vm1238_vm7 = vcmp.gt.f32.partialorder %v1230_v13, 0.0 }
 0x36d   : > { %v1198_v30 = vpop.permute.xlu1 %1197 }
 0x36e   : > { %v1206_v32 = vpop.permute.xlu0 %1205  ;;  %1268 = vmax.xlane.f32.xlu0 %v3286_v29  ;;  %v1254_v33 = vsel %vm1238_vm7, %v1230_v13, %v1246_v27  ;;  %v1229_v42 = vadd.f32 %v3268_v0, %v1198_v30 }
 0x36f   : > { %v3289_v35 = vadd.f32 %v1254_v33, %v928_v3  ;;  %v1231_v37 = vadd.f32 %v3268_v0, %v1206_v32  ;;  %v907_v32 = vunpack.c.1.s8 %v3281_v19 }
 0x370   : > { %v1245_v56 = vmul.f32 0.2, %v1229_v42  ;;  %vm1237_vm1 = vcmp.gt.f32.partialorder %v1229_v42, 0.0 }
 0x371   : > { %v1218_v40 = vpop.permute.xlu1 %1217  ;;  %1272 = vmax.xlane.f32.xlu1 %v3289_v35  ;;  %v1247_v46 = vmul.f32 0.2, %v1231_v37  ;;  %vm1239_vm13 = vcmp.gt.f32.partialorder %v1231_v37, 0.0  ;;  %v915_v41 = vcvt.s32.f32 %v907_v32 }
 0x372   : > { %v1234_v57 = vadd.f32 %v3268_v0, %v1218_v40  ;;  %v1253_v13 = vsel %vm1237_vm1, %v1229_v42, %v1245_v56 }
 0x373   : > { %v942_v43 = vpop.permute.xlu0 %941  ;;  %v1255_v63 = vsel %vm1239_vm13, %v1231_v37, %v1247_v46  ;;  %v3320_v18 = vadd.f32 %v1253_v13, %v927_v50  ;;  %vm923_vm8 = vcmp.gt.f32.partialorder %v915_v41, 0.0 }
 0x374   : > { %v979_v47 = vadd.f32 %v3265_v55, %v942_v43  ;;  %v3313_v6 = vadd.f32 %v1255_v63, %v929_v45  ;;  %v1250_v10 = vmul.f32 0.2, %v1234_v57  ;;  %vm1242_vm3 = vcmp.gt.f32.partialorder %v1234_v57, 0.0 }
 0x375   : > { %v1210_v49 = vpop.permute.xlu1 %1209  ;;  %1018 = vmax.xlane.f32.xlu1 %v3295_v44  ;;  %v931_v48 = vsel %vm923_vm8, 0.0, %v2756_v2 }
 0x376   : > { %v995_v52 = vmul.f32 0.2, %v979_v47  ;;  %v1232_v53 = vadd.f32 %v3268_v0, %v1210_v49  ;;  %vm987_vm14 = vcmp.gt.f32.partialorder %v979_v47, 0.0  ;;  %v1258_v25 = vsel %vm1242_vm3, %v1234_v57, %v1250_v10 }
 0x377   : > { %v3304_v58 = vpop.permute.xlu0 %966  ;;  %v3328_v34 = vadd.f32 %v1258_v25, %v932_v20 }
 0x378   : > { %v1248_v61 = vmul.f32 0.2, %v1232_v53  ;;  %v1003_v62 = vsel %vm987_vm14, %v979_v47, %v995_v52  ;;  %vm1240_vm15 = vcmp.gt.f32.partialorder %v1232_v53, 0.0  ;;  %v984_v52 = vadd.f32 %v3265_v55, %v3304_v58 }
 0x379   : > { %1024 = vmax.xlane.f32.xlu1 %v3306_v59  ;;  %v3310_v1 = vadd.f32 %v1003_v62, %v927_v50 }
 0x37a   : > { %v972_v3 = vpop.permute.xlu1 %971  ;;  %v1256_v4 = vsel %vm1240_vm15, %v1232_v53, %v1248_v61  ;;  %v1000_v2 = vmul.f32 0.2, %v984_v52  ;;  %vm992_vm11 = vcmp.gt.f32.partialorder %v984_v52, 0.0 }
 0x37b   : > { %v957_v5 = vpop.permute.xlu0 %956  ;;  %1020 = vmax.xlane.f32.xlu0 %v3310_v1  ;;  %v3315_v9 = vadd.f32 %v1256_v4, %v930_v60  ;;  %v985_v11 = vadd.f32 %v3265_v55, %v972_v3 }
 0x37c   : > { %v982_v12 = vadd.f32 %v3265_v55, %v957_v5  ;;  %v1008_v53 = vsel %vm992_vm11, %v984_v52, %v1000_v2 }
 0x37d   : > { %1274 = vmax.xlane.f32.xlu1 %v3313_v6  ;;  %v1001_v22 = vmul.f32 0.2, %v985_v11  ;;  %vm993_vm6 = vcmp.gt.f32.partialorder %v985_v11, 0.0  ;;  %v3353_v54 = vadd.f32 %v1008_v53, %v932_v20 }
 0x37e   : > { %v998_v16 = vmul.f32 0.2, %v982_v12  ;;  %vm990_vm4 = vcmp.gt.f32.partialorder %v982_v12, 0.0  ;;  %v962_v27 = vpop.permute.xlu1 %961 }
 0x37f   : > { %v983_v36 = vadd.f32 %v3265_v55, %v962_v27  ;;  %v1009_v39 = vsel %vm993_vm6, %v985_v11, %v1001_v22 }
 0x380   : > { %v1222_v23 = vpop.permute.xlu0 %1221  ;;  %v1006_v26 = vsel %vm990_vm4, %v982_v12, %v998_v16  ;;  %v3333_v42 = vadd.f32 %v1009_v39, %v933_v38 }
 0x381   : > { %v1235_v30 = vadd.f32 %v3268_v0, %v1222_v23  ;;  %1270 = vmax.xlane.f32.xlu1 %v3320_v18  ;;  %v3326_v33 = vadd.f32 %v1006_v26, %v930_v60  ;;  %v999_v43 = vmul.f32 0.2, %v983_v36  ;;  %vm991_vm9 = vcmp.gt.f32.partialorder %v983_v36, 0.0 }
 0x383   : > { %v1251_v37 = vmul.f32 0.2, %v1235_v30  ;;  %vm1243_vm7 = vcmp.gt.f32.partialorder %v1235_v30, 0.0  ;;  %v1007_v49 = vsel %vm991_vm9, %v983_v36, %v999_v43 }
 0x384   : > { %v1214_v40 = vpop.permute.xlu0 %1213  ;;  %v3341_v50 = vadd.f32 %v1007_v49, %v931_v48 }
 0x385   : > { %1280 = vmax.xlane.f32.xlu1 %v3328_v34  ;;  %v1233_v19 = vadd.f32 %v3268_v0, %v1214_v40  ;;  %v1259_v45 = vsel %vm1243_vm7, %v1235_v30, %v1251_v37 }
 0x386   : > { %v3337_v46 = vadd.f32 %v1259_v45, %v933_v38 }
 0x387   : > { %v1249_v47 = vmul.f32 0.2, %v1233_v19  ;;  %vm1241_vm10 = vcmp.gt.f32.partialorder %v1233_v19, 0.0 }
 0x389   : > { %1032 = vmax.xlane.f32.xlu1 %v3333_v42  ;;  %v1257_v51 = vsel %vm1241_vm10, %v1233_v19, %v1249_v47 }
 0x38a   : > { %v3346_v0 = vadd.f32 %v1257_v51, %v931_v48 }
 0x38d   : > { %1282 = vmax.xlane.f32.xlu1 %v3337_v46 }
 0x391   : > { %1340 = vrot.lane.b32.xlu0 %v3215_v17, %s2755_s21  ;;  %1028 = vmax.xlane.f32.xlu1 %v3341_v50  ;;  %v1339_v17 = vpop.permute.xlu1 %1338 }
 0x395   : > { %1278 = vmax.xlane.f32.xlu1 %v3346_v0 }
 0x3a6   : > { %1342 = vrot.lane.b32.xlu1 %v3211_v14, %s2755_s21 }
 0x3b0   : > { %1030 = vmax.xlane.f32.xlu0 %v3353_v54 }
 0x3b4   : > { %1026 = vmax.xlane.f32.xlu0 %v3326_v33 }
 0x3b8   : > { %1276 = vmax.xlane.f32.xlu0 %v3315_v9 }
 0x3ce   : > { %1344 = vrot.lane.b32.xlu0 %v3228_v24, %s2755_s21 }
 0x3d2   : > { %1346 = vrot.lane.b32.xlu0 %v3224_v21, %s2755_s21 }
 0x3d6   : > { %1348 = vrot.lane.b32.xlu0 %v3239_v31, %s2755_s21 }
 0x3da   : > { %1350 = vrot.lane.b32.xlu0 %v3235_v28, %s2755_s21 }
 0x3f5   : > { %v1023_v14 = vpop.xlane.xlu0 %1022 }
 0x3f6   : > { %v1036_v31 = vsub.f32 %v3271_v7, %v1023_v14 }
 0x3f8   : > { %v1046_v8 = vmul.f32 1.442695, %v1036_v31 }
 0x3fb   : > { %v1269_v55 = vpop.xlane.xlu0 %1268 }
 0x3fc   : > { %v1284_v56 = vsub.f32 %v3286_v29, %v1269_v55 }
 0x3fe   : > { %v1292_v57 = vmul.f32 1.442695, %v1284_v56  ;;  %v1273_v58 = vpop.xlane.xlu1 %1272 }
 0x3ff   : > { %v1286_v60 = vsub.f32 %v3289_v35, %v1273_v58 }
 0x400   : > { %2296 = vpow2.f32 %v1292_v57 }
 0x401   : > { %v1296_v24 = vmul.f32 1.442695, %v1286_v60 }
 0x402   : > { %v1019_v61 = vpop.xlane.xlu1 %1018 }
 0x403   : > { %2298 = vpow2.f32 %v1296_v24  ;;  %v1034_v21 = vsub.f32 %v3295_v44, %v1019_v61 }
 0x405   : > { %v1042_v63 = vmul.f32 1.442695, %v1034_v21 }
 0x406   : > { %v1025_v62 = vpop.xlane.xlu1 %1024 }
 0x407   : > { %v1037_v28 = vsub.f32 %v3306_v59, %v1025_v62  ;;  %2300 = vpow2.f32 %v1042_v63 }
 0x408   : > { %v1021_v3 = vpop.xlane.xlu0 %1020 }
 0x409   : > { %v1048_v4 = vmul.f32 1.442695, %v1037_v28  ;;  %v1035_v29 = vsub.f32 %v3310_v1, %v1021_v3 }
 0x40a   : > { %v3372_v5 = vpop.eup %2296  ;;  %v1275_v35 = vpop.xlane.xlu1 %1274 }
 0x40b   : > { %v1044_v10 = vmul.f32 1.442695, %v1035_v29  ;;  %v1287_v11 = vsub.f32 %v3313_v6, %v1275_v35  ;;  %1308 = vadd.xlane.f32.xlu1 %v3372_v5  ;;  %2302 = vpow2.f32 %v1048_v4  ;;  %v3414_v4 = vld [vmem:[#allocation12] ss:$0 sm:$0xff]  ;;  %v1464_v29 = vld [vmem:[#allocation14 + $0x20] sm:$0xff]  ;;  %v1466_v35 = vld [vmem:[#allocation14 + $0x30] sm:$0xff] }
 0x40c   : > { %v1341_v38 = vpop.permute.xlu0 %1340 }
 0x40d   : > { %v3376_v7 = vpop.eup %2298  ;;  %2304 = vpow2.f32 %v1044_v10  ;;  %v1298_v44 = vmul.f32 1.442695, %v1287_v11  ;;  %v1467_v10 = vld [vmem:[#allocation14 + $0x38] sm:$0xff] }
 0x40e   : > { %2306 = vpow2.f32 %v1046_v8  ;;  %1312 = vadd.xlane.f32.xlu0 %v3376_v7  ;;  %v1271_v59 = vpop.xlane.xlu1 %1270  ;;  %v1469_v11 = vpack.c.bf16 %v1467_v10, %v1466_v35 }
 0x40f   : > { %2308 = vpow2.f32 %v1298_v44  ;;  %v1285_v1 = vsub.f32 %v3320_v18, %v1271_v59  ;;  %v1187_v44 = vld [vmem:[#allocation14 + $0x8] sm:$0xff] }
 0x411   : > { %v1294_v12 = vmul.f32 1.442695, %v1285_v1  ;;  %v3381_v6 = vpop.eup %2300 }
 0x412   : > { %v1281_v13 = vpop.xlane.xlu1 %1280 }
 0x413   : > { %2310 = vpow2.f32 %v1294_v12  ;;  %v1290_v16 = vsub.f32 %v3328_v34, %v1281_v13 }
 0x415   : > { %v1304_v20 = vmul.f32 1.442695, %v1290_v16  ;;  %v2303_v22 = vpop.eup %2302 }
 0x416   : > { %v1033_v23 = vpop.xlane.xlu1 %1032 }
 0x417   : > { %v2305_v25 = vpop.eup %2304  ;;  %2312 = vpow2.f32 %v1304_v20  ;;  %v1041_v49 = vsub.f32 %v3333_v42, %v1033_v23 }
 0x418   : > { %v3383_v26 = vpop.eup %2306  ;;  %v1074_v27 = vpack.c.bf16 %v2305_v25, %v3381_v6 }
 0x419   : > { %v3386_v30 = vpop.eup %2308  ;;  %v1075_v18 = vpack.c.bf16 %v2303_v22, %v3383_v26 }
 0x41a   : > { %2093 = vmatprep.mubr.bf16.mxu1 %v1074_v27  ;;  %1314 = vadd.xlane.f32.xlu1 %v3386_v30  ;;  %v1283_v32 = vpop.xlane.xlu1 %1282  ;;  %v1325_v34 = vpack.c.bf16 %v3386_v30, %v3376_v7  ;;  %v1186_v7 = vld [vmem:[#allocation14] sm:$0xff] }
 0x41b   : > { %2094 = vmatmul.mubr.bf16.vlgmr.msra.gmra.mrb[16].mxu1 %v1075_v18  ;;  %v1291_v41 = vsub.f32 %v3337_v46, %v1283_v32  ;;  %v1056_v46 = vmul.f32 1.442695, %v1041_v49  ;;  %v3418_v59 = vpack.c.bf16 %v1187_v44, %v1186_v7 }
 0x41c   : > { %2102 = vmatpush3.bf16.msra.mxu1 %v3277_v15 }
 0x41d   : > { %v3393_v36 = vpop.eup %2310  ;;  %2103 = vmatprep.subr.bf16.mxu1 %v1339_v17  ;;  %v1306_v45 = vmul.f32 1.442695, %v1291_v41 }
 0x41e   : > { %1310 = vadd.xlane.f32.xlu0 %v3393_v36  ;;  %v1029_v37 = vpop.xlane.xlu1 %1028 }
 0x41f   : > { %v1039_v47 = vsub.f32 %v3341_v50, %v1029_v37 }
 0x420   : > { %2104 = vmatpush3.bf16.msra.mxu1 %v1339_v17 }
 0x421   : > { %v3396_v39 = vpop.eup %2312  ;;  %2105 = vmatprep.subr.bf16.mxu1 %v1341_v38  ;;  %v1052_v51 = vmul.f32 1.442695, %v1039_v47 }
 0x422   : > { %1320 = vadd.xlane.f32.xlu0 %v3396_v39  ;;  %v1279_v40 = vpop.xlane.xlu1 %1278 }
 0x423   : > { %v1289_v43 = vsub.f32 %v3346_v0, %v1279_v40 }
 0x424   : > { %2106 = vmatpush3.bf16.msra.mxu1 %v1341_v38 }
 0x425   : > { %v1302_v15 = vmul.f32 1.442695, %v1289_v43 }
 0x426   : > { %v1343_v19 = vpop.permute.xlu1 %1342 }
 0x427   : > { %2314 = vpow2.f32 %v1302_v15  ;;  %2107 = vmatprep.subr.bf16.mxu1 %v1343_v19 }
 0x428   : > { %2108 = vmatpush3.bf16.msra.mxu1 %v1343_v19  ;;  %2316 = vpow2.f32 %v1306_v45 }
 0x429   : > { %2318 = vpow2.f32 %v1052_v51 }
 0x42a   : > { %2320 = vpow2.f32 %v1056_v46 }
 0x431   : > { %v2315_v48 = vpop.eup %2314 }
 0x432   : > { %1318 = vadd.xlane.f32.xlu1 %v2315_v48  ;;  %v2317_v52 = vpop.eup %2316 }
 0x433   : > { %v2319_v53 = vpop.eup %2318  ;;  %v1327_v3 = vpack.c.bf16 %v2317_v52, %v3396_v39 }
 0x434   : > { %v2321_v56 = vpop.eup %2320 }
 0x436   : > { %1322 = vadd.xlane.f32.xlu1 %v2317_v52 }
 0x43a   : > { %1060 = vadd.xlane.f32.xlu1 %v2305_v25 }
 0x43d   : > { %v1031_v0 = vpop.xlane.xlu0 %1030 }
 0x43e   : > { %v1040_v2 = vsub.f32 %v3353_v54, %v1031_v0  ;;  %1064 = vadd.xlane.f32.xlu1 %v2303_v22 }
 0x440   : > { %v1054_v14 = vmul.f32 1.442695, %v1040_v2 }
 0x441   : > { %v1027_v17 = vpop.xlane.xlu0 %1026 }
 0x442   : > { %v1038_v50 = vsub.f32 %v3326_v33, %v1027_v17  ;;  %1068 = vadd.xlane.f32.xlu1 %v2319_v53  ;;  %2322 = vpow2.f32 %v1054_v14 }
 0x444   : > { %v1050_v55 = vmul.f32 1.442695, %v1038_v50 }
 0x445   : > { %v1277_v42 = vpop.xlane.xlu0 %1276 }
 0x446   : > { %2324 = vpow2.f32 %v1050_v55  ;;  %v1288_v57 = vsub.f32 %v3315_v9, %v1277_v42  ;;  %1072 = vadd.xlane.f32.xlu1 %v2321_v56  ;;  %v1324_v9 = vpack.c.bf16 %v3393_v36, %v3372_v5  ;;  %v1465_v5 = vld [vmem:[#allocation14 + $0x28] sm:$0xff] }
 0x447   : > { %v1468_v8 = vpack.c.bf16 %v1465_v5, %v1464_v29 }
 0x448   : > { %v1300_v58 = vmul.f32 1.442695, %v1288_v57 }
 0x449   : > { %v1345_v60 = vpop.permute.xlu0 %1344  ;;  %2125 = vmatprep.subr.bf16.mxu0 %v1468_v8 }
 0x44a   : > { %2326 = vpow2.f32 %v1300_v58  ;;  %2109 = vmatprep.subr.bf16.mxu1 %v1345_v60  ;;  %2126 = vmatpush3.bf16.msra.mxu0 %v1468_v8 }
 0x44b   : > { %2110 = vmatpush3.bf16.msra.mxu1 %v1345_v60  ;;  %2127 = vmatprep.subr.bf16.mxu0 %v1469_v11 }
 0x44c   : > { %v2323_v24 = vpop.eup %2322 }
 0x44d   : > { %v1347_v54 = vpop.permute.xlu0 %1346  ;;  %v1077_v31 = vpack.c.bf16 %v2321_v56, %v2323_v24 }
 0x44e   : > { %2111 = vmatprep.subr.bf16.mxu1 %v1347_v54  ;;  %2128 = vmatpush3.bf16.msra.mxu0 %v1469_v11 }
 0x44f   : > { %2112 = vmatpush3.bf16.msra.mxu1 %v1347_v54  ;;  %2137 = vmatprep.subr.bf16.mxu0 %v3418_v59 }
 0x450   : > { %v2325_v61 = vpop.eup %2324 }
 0x451   : > { %v1349_v33 = vpop.permute.xlu0 %1348  ;;  %v1076_v21 = vpack.c.bf16 %v2319_v53, %v2325_v61 }
 0x452   : > { %2113 = vmatprep.subr.bf16.mxu1 %v1349_v33 }
 0x453   : > { %2097 = vmatprep.mubr.bf16.mxu1 %v1076_v21  ;;  %2114 = vmatpush3.bf16.msra.mxu1 %v1349_v33 }
 0x454   : > { %v2327_v62 = vpop.eup %2326  ;;  %2098 = vmatmul.mubr.bf16.gmra.mrb[20].mxu1 %v1077_v31 }
 0x455   : > { %v1351_v63 = vpop.permute.xlu0 %1350  ;;  %1316 = vadd.xlane.f32.xlu0 %v2327_v62  ;;  %2117 = vmatprep.mubr.bf16.mxu1 %v1324_v9  ;;  %v1326_v28 = vpack.c.bf16 %v2315_v48, %v2327_v62 }
 0x456   : > { %2115 = vmatprep.subr.bf16.mxu1 %v1351_v63 }
 0x457   : > { %2116 = vmatpush3.bf16.msra.mxu1 %v1351_v63 }
 0x459   : > { %1058 = vadd.xlane.f32.xlu0 %v3381_v6 }
 0x45c   : > { %2118 = vmatmul.mubr.bf16.vlgmr.msra.gmra.mrb[24].mxu1 %v1325_v34 }
 0x45d   : > { %1062 = vadd.xlane.f32.xlu0 %v3383_v26  ;;  %2121 = vmatprep.mubr.bf16.mxu1 %v1326_v28 }
 0x461   : > { %1066 = vadd.xlane.f32.xlu0 %v2325_v61 }
 0x464   : > { %2122 = vmatmul.mubr.bf16.gmra.mrb[28].mxu1 %v1327_v3 }
 0x465   : > { %1070 = vadd.xlane.f32.xlu0 %v2323_v24 }
 0x47b   : > { %1441 = vrot.lane.b32.xlu0 %v3414_v4, %s2755_s21 }
 0x498   : > { %v1309_v1 = vpop.xlane.xlu1 %1308 }
 0x49b   : > { %v1313_v16 = vpop.xlane.xlu0 %1312 }
 0x4a7   : > { %v1315_v12 = vpop.xlane.xlu1 %1314 }
 0x4ab   : > { %v1311_v20 = vpop.xlane.xlu0 %1310 }
 0x4af   : > { %v1321_v23 = vpop.xlane.xlu0 %1320 }
 0x4bf   : > { %v3421_v13 = vpop.xlane.xlu1 %1318 }
 0x4c3   : > { %v3423_v6 = vpop.xlane.xlu1 %1322 }
 0x4c7   : > { %v1061_v22 = vpop.xlane.xlu1 %1060 }
 0x4c8   : > { %2328 = vrcp.f32 %v1061_v22 }
 0x4cb   : > { %v1065_v26 = vpop.xlane.xlu1 %1064 }
 0x4cc   : > { %2330 = vrcp.f32 %v1065_v26 }
 0x4cf   : > { %v1069_v17 = vpop.xlane.xlu1 %1068 }
 0x4d2   : > { %v2329_v32 = vpop.eup %2328 }
 0x4d3   : > { %v1073_v55 = vpop.xlane.xlu1 %1072 }
 0x4d6   : > { %v2331_v36 = vpop.eup %2330 }
 0x4e2   : > { %v1317_v25 = vpop.xlane.xlu0 %1316 }
 0x4e6   : > { %v1059_v27 = vpop.xlane.xlu0 %1058 }
 0x4e7   : > { %2332 = vrcp.f32 %v1059_v27 }
 0x4ea   : > { %v1063_v30 = vpop.xlane.xlu0 %1062 }
 0x4eb   : > { %2334 = vrcp.f32 %v1063_v30 }
 0x4ee   : > { %v2095_v18 = vpop.f32.mrb[16].mxu1  ;;  %v1067_v14 = vpop.xlane.xlu0 %1066 }
 0x4ef   : > { %v1112_v34 = vpop.f32.mrb[17].mxu1 }
 0x4f0   : > { %v2096_v37 = vpop.f32.mrb[18].mxu1 }
 0x4f1   : > { %v2333_v38 = vpop.eup %2332  ;;  %v1115_v39 = vpop.f32.mrb[19].mxu1  ;;  %v1154_v41 = vmul.f32 %v2331_v36, %v2096_v37 }
 0x4f2   : > { %v1151_v40 = vmul.f32 %v2333_v38, %v1112_v34  ;;  %v1152_v43 = vmul.f32 %v2329_v32, %v1115_v39  ;;  %v1071_v50 = vpop.xlane.xlu0 %1070 }
 0x4f3   : > { %v1169_v49 = vadd.f32 %v3414_v4, %v1154_v41  ;;  %2336 = vrcp.f32 %v1071_v50  ;;  %v1188_v41 = vld [vmem:[#allocation14 + $0x10] sm:$0xff] }
 0x4f4   : > { %v1166_v15 = vadd.f32 %v3414_v4, %v1151_v40  ;;  %v1167_v19 = vadd.f32 %v3414_v4, %v1152_v43  ;;  %2338 = vrcp.f32 %v1067_v14  ;;  %v1189_v43 = vld [vmem:[#allocation14 + $0x18] sm:$0xff] }
 0x4f5   : > { %v2335_v45 = vpop.eup %2334  ;;  %v1177_v2 = vmax.f32 %v1169_v49, 0.0  ;;  %2340 = vrcp.f32 %v1073_v55  ;;  %v1191_v50 = vpack.c.bf16 %v1189_v43, %v1188_v41 }
 0x4f6   : > { %v1153_v47 = vmul.f32 %v2335_v45, %v2095_v18  ;;  %v1174_v48 = vmax.f32 %v1166_v15, 0.0  ;;  %v1175_v51 = vmax.f32 %v1167_v19, 0.0  ;;  %2342 = vrcp.f32 %v1069_v17  ;;  %v1442_v7 = vpop.permute.xlu0 %1441 }
 0x4f7   : > { %2344 = vrcp.f32 %v1313_v16 }
 0x4f8   : > { %v1168_v52 = vadd.f32 %v3414_v4, %v1153_v47  ;;  %v3429_v46 = vpack.c.bf16 %v1175_v51, %v1174_v48  ;;  %2346 = vrcp.f32 %v1309_v1 }
 0x4f9   : > { %2348 = vrcp.f32 %v1315_v12 }
 0x4fa   : > { %v1176_v0 = vmax.f32 %v1168_v52, 0.0  ;;  %2350 = vrcp.f32 %v1311_v20 }
 0x4fb   : > { %2352 = vrcp.f32 %v1321_v23 }
 0x4fc   : > { %v3431_v53 = vpack.c.bf16 %v1177_v2, %v1176_v0  ;;  %2354 = vrcp.f32 %v1317_v25 }
 0x4fd   : > { %v2337_v56 = vpop.eup %2336  ;;  %2356 = vrcp.f32 %v3423_v6 }
 0x4fe   : > { %v2339_v57 = vpop.eup %2338  ;;  %2358 = vrcp.f32 %v3421_v13 }
 0x4ff   : > { %v2341_v54 = vpop.eup %2340 }
 0x500   : > { %v2343_v33 = vpop.eup %2342 }
 0x501   : > { %v2345_v8 = vpop.eup %2344 }
 0x502   : > { %v2347_v44 = vpop.eup %2346 }
 0x503   : > { %v2349_v20 = vpop.eup %2348 }
 0x504   : > { %v2351_v25 = vpop.eup %2350 }
 0x505   : > { %v2353_v38 = vpop.eup %2352 }
 0x506   : > { %v2355_v15 = vpop.eup %2354 }
 0x507   : > { %v2357_v48 = vpop.eup %2356 }
 0x508   : > { %v2359_v0 = vpop.eup %2358 }
 0x527   : > { %v2099_v42 = vpop.f32.mrb[20].mxu1 }
 0x528   : > { %v1157_v58 = vmul.f32 %v2337_v56, %v2099_v42  ;;  %v1128_v60 = vpop.f32.mrb[21].mxu1 }
 0x529   : > { %v1155_v24 = vmul.f32 %v2339_v57, %v1128_v60  ;;  %v2100_v61 = vpop.f32.mrb[22].mxu1 }
 0x52a   : > { %v1172_v21 = vadd.f32 %v3414_v4, %v1157_v58  ;;  %v1158_v31 = vmul.f32 %v2341_v54, %v2100_v61  ;;  %v1131_v9 = vpop.f32.mrb[23].mxu1 }
 0x52b   : > { %v1170_v62 = vadd.f32 %v3414_v4, %v1155_v24  ;;  %v1156_v63 = vmul.f32 %v2343_v33, %v1131_v9 }
 0x52c   : > { %v1173_v28 = vadd.f32 %v3414_v4, %v1158_v31  ;;  %v1180_v29 = vmax.f32 %v1172_v21, 0.0 }
 0x52d   : > { %v1171_v3 = vadd.f32 %v3414_v4, %v1156_v63  ;;  %v1178_v35 = vmax.f32 %v1170_v62, 0.0 }
 0x52e   : > { %v1181_v5 = vmax.f32 %v1173_v28, 0.0 }
 0x52f   : > { %v1179_v10 = vmax.f32 %v1171_v3, 0.0  ;;  %v2119_v11 = vpop.f32.mrb[24].mxu1 }
 0x530   : > { %v1185_v1 = vpack.c.bf16 %v1181_v5, %v1180_v29  ;;  %v1435_v12 = vmul.f32 %v2345_v8, %v2119_v11  ;;  %v1394_v16 = vpop.f32.mrb[25].mxu1 }
 0x531   : > { %v1184_v22 = vpack.c.bf16 %v1179_v10, %v1178_v35  ;;  %v1433_v23 = vmul.f32 %v2347_v44, %v1394_v16  ;;  %v2120_v4 = vpop.f32.mrb[26].mxu1 }
 0x532   : > { %v1436_v26 = vmul.f32 %v2349_v20, %v2120_v4  ;;  %v1446_v27 = vadd.f32 %v1442_v7, %v1435_v12  ;;  %v1397_v30 = vpop.f32.mrb[27].mxu1 }
 0x533   : > { %v1434_v18 = vmul.f32 %v2351_v25, %v1397_v30  ;;  %v1444_v6 = vadd.f32 %v1442_v7, %v1433_v23 }
 0x534   : > { %v1447_v32 = vadd.f32 %v1442_v7, %v1436_v26  ;;  %v1454_v36 = vmax.f32 %v1446_v27, 0.0 }
 0x535   : > { %v1445_v34 = vadd.f32 %v1442_v7, %v1434_v18  ;;  %v1452_v39 = vmax.f32 %v1444_v6, 0.0 }
 0x536   : > { %v1455_v37 = vmax.f32 %v1447_v32, 0.0 }
 0x537   : > { %v1453_v13 = vmax.f32 %v1445_v34, 0.0  ;;  %v2123_v40 = vpop.f32.mrb[28].mxu1 }
 0x538   : > { %v1461_v19 = vpack.c.bf16 %v1455_v37, %v1454_v36  ;;  %v1439_v45 = vmul.f32 %v2353_v38, %v2123_v40  ;;  %v1410_v47 = vpop.f32.mrb[29].mxu1 }
 0x539   : > { %v1460_v49 = vpack.c.bf16 %v1453_v13, %v1452_v39  ;;  %v1437_v51 = vmul.f32 %v2355_v15, %v1410_v47  ;;  %v2124_v52 = vpop.f32.mrb[30].mxu1 }
 0x53a   : > { %v1450_v2 = vadd.f32 %v1442_v7, %v1439_v45  ;;  %v1440_v14 = vmul.f32 %v2357_v48, %v2124_v52  ;;  %v1413_v17 = vpop.f32.mrb[31].mxu1 }
 0x53b   : > { %v1448_v55 = vadd.f32 %v1442_v7, %v1437_v51  ;;  %v1438_v56 = vmul.f32 %v2359_v0, %v1413_v17  ;;  %2129 = vmatprep.mubr.msk.bf16.mxu0 %vm518_vm0, %v1460_v49 }
 0x53c   : > { %v1451_v42 = vadd.f32 %v1442_v7, %v1440_v14  ;;  %2130 = vmatmul.mubr.msk.bf16.vlgmr.msra.gmra.mrb[20].mxu0 %vm518_vm0, %v1461_v19  ;;  %v1458_v58 = vmax.f32 %v1450_v2, 0.0 }
 0x53d   : > { %v1449_v57 = vadd.f32 %v1442_v7, %v1438_v56  ;;  %2138 = vmatpush3.bf16.msra.mxu0 %v3418_v59  ;;  %v1456_v54 = vmax.f32 %v1448_v55, 0.0  ;;  %v1923_v59 = vld [vmem:[#allocation15] ss:$0 sm:$0xff] }
 0x53e   : > { %v1459_v60 = vmax.f32 %v1451_v42, 0.0  ;;  %2139 = vmatprep.subr.bf16.mxu0 %v1191_v50 }
 0x53f   : > { %v1457_v24 = vmax.f32 %v1449_v57, 0.0 }
 0x540   : > { %v1463_v61 = vpack.c.bf16 %v1459_v60, %v1458_v58 }
 0x541   : > { %v1462_v33 = vpack.c.bf16 %v1457_v24, %v1456_v54  ;;  %2140 = vmatpush3.bf16.msra.mxu0 %v1191_v50 }
 0x543   : > { %2133 = vmatprep.mubr.msk.bf16.mxu0 %vm518_vm0, %v1462_v33 }
 0x544   : > { %2134 = vmatmul.mubr.msk.bf16.gmra.mrb[24].mxu0 %vm518_vm0, %v1463_v61 }
 0x545   : > { %2141 = vmatprep.mubr.msk.bf16.mxu0 %vm518_vm0, %v3429_v46 }
 0x54c   : > { %2142 = vmatmul.mubr.msk.bf16.vlgmr.msra.gmra.mrb[20].mxu0 %vm518_vm0, %v3431_v53 }
 0x54d   : > { %2145 = vmatprep.mubr.msk.bf16.mxu0 %vm518_vm0, %v1184_v22 }
 0x554   : > { %2146 = vmatmul.mubr.msk.bf16.gmra.mrb[24].mxu0 %vm518_vm0, %v1185_v1  ;;  %vm1687_vm0 = vcmask 64512  }
 0x61f   : > { %v2143_v21 = vpop.f32.mrb[20].mxu0 }
 0x620   : > { %v1633_v31 = vadd.f32 %v2143_v21, %v1923_v59  ;;  %v1593_v9 = vpop.f32.mrb[21].mxu0 }
 0x621   : > { %v1631_v62 = vadd.f32 %v1923_v59, %v1593_v9  ;;  %v2144_v63 = vpop.f32.mrb[22].mxu0 }
 0x622   : > { %v1926_v28 = vmul.f32 -1.442695, %v1633_v31  ;;  %v1634_v3 = vadd.f32 %v2144_v63, %v1923_v59  ;;  %v1596_v29 = vpop.f32.mrb[23].mxu0 }
 0x623   : > { %v1924_v5 = vmul.f32 -1.442695, %v1631_v62  ;;  %v1632_v8 = vadd.f32 %v1923_v59, %v1596_v29 }
 0x624   : > { %2360 = vpow2.f32 %v1926_v28  ;;  %v1927_v46 = vmul.f32 -1.442695, %v1634_v3 }
 0x625   : > { %2362 = vpow2.f32 %v1924_v5  ;;  %v1925_v35 = vmul.f32 -1.442695, %v1632_v8 }
 0x626   : > { %2364 = vpow2.f32 %v1927_v46 }
 0x627   : > { %2366 = vpow2.f32 %v1925_v35  ;;  %v2147_v53 = vpop.f32.mrb[24].mxu0 }
 0x628   : > { %v1637_v10 = vadd.f32 %v2147_v53, %v1923_v59  ;;  %v1609_v11 = vpop.f32.mrb[25].mxu0 }
 0x629   : > { %v1635_v7 = vadd.f32 %v1923_v59, %v1609_v11  ;;  %v2148_v44 = vpop.f32.mrb[26].mxu0 }
 0x62a   : > { %v1930_v1 = vmul.f32 -1.442695, %v1637_v10  ;;  %v1638_v12 = vadd.f32 %v2148_v44, %v1923_v59  ;;  %v1612_v16 = vpop.f32.mrb[27].mxu0 }
 0x62b   : > { %v1928_v20 = vmul.f32 -1.442695, %v1635_v7  ;;  %v1636_v22 = vadd.f32 %v1923_v59, %v1612_v16 }
 0x62c   : > { %2368 = vpow2.f32 %v1930_v1  ;;  %v1931_v23 = vmul.f32 -1.442695, %v1638_v12 }
 0x62d   : > { %2370 = vpow2.f32 %v1928_v20  ;;  %v1929_v4 = vmul.f32 -1.442695, %v1636_v22 }
 0x62e   : > { %v2361_v25 = vpop.eup %2360  ;;  %2372 = vpow2.f32 %v1931_v23 }
 0x62f   : > { %v2363_v26 = vpop.eup %2362  ;;  %v1665_v27 = vadd.f32 1.0, %v2361_v25  ;;  %2374 = vpow2.f32 %v1929_v4 }
 0x630   : > { %v2365_v30 = vpop.eup %2364  ;;  %v1663_v18 = vadd.f32 1.0, %v2363_v26 }
 0x631   : > { %v2367_v6 = vpop.eup %2366  ;;  %2376 = vrcp.f32 %v1665_v27  ;;  %v1666_v32 = vadd.f32 1.0, %v2365_v30 }
 0x632   : > { %2378 = vrcp.f32 %v1663_v18  ;;  %v1664_v34 = vadd.f32 1.0, %v2367_v6 }
 0x633   : > { %2380 = vrcp.f32 %v1666_v32 }
 0x634   : > { %2382 = vrcp.f32 %v1664_v34 }
 0x636   : > { %v2369_v36 = vpop.eup %2368 }
 0x637   : > { %v2371_v37 = vpop.eup %2370  ;;  %v1669_v38 = vadd.f32 1.0, %v2369_v36 }
 0x638   : > { %v2373_v39 = vpop.eup %2372  ;;  %v1667_v13 = vadd.f32 1.0, %v2371_v37 }
 0x639   : > { %v2375_v40 = vpop.eup %2374  ;;  %2384 = vrcp.f32 %v1669_v38  ;;  %v1670_v41 = vadd.f32 1.0, %v2373_v39 }
 0x63a   : > { %2386 = vrcp.f32 %v1667_v13  ;;  %v1668_v43 = vadd.f32 1.0, %v2375_v40 }
 0x63b   : > { %v2377_v15 = vpop.eup %2376  ;;  %2388 = vrcp.f32 %v1670_v41 }
 0x63c   : > { %v2379_v19 = vpop.eup %2378  ;;  %2390 = vrcp.f32 %v1668_v43  ;;  %1690 = vst.msk [vmem:[%s483_s28 + $0x10] sm:$0xff] %vm1687_vm0, %v2377_v15 }
 0x63d   : > { %v2381_v45 = vpop.eup %2380  ;;  %1688 = vst.msk [vmem:[%s483_s28] sm:$0xff] %vm1687_vm0, %v2379_v19 }
 0x63e   : > { %v2383_v47 = vpop.eup %2382  ;;  %1691 = vst.msk [vmem:[%s483_s28 + $0x18] sm:$0xff] %vm1687_vm0, %v2381_v45 }
 0x63f   : > { %1689 = vst.msk [vmem:[%s483_s28 + $0x8] sm:$0xff] %vm1687_vm0, %v2383_v47 }
 0x643   : > { %v2385_v48 = vpop.eup %2384 }
 0x644   : > { %v2387_v49 = vpop.eup %2386  ;;  %1694 = vst.msk [vmem:[%s483_s28 + $0x30] sm:$0xff] %vm1687_vm0, %v2385_v48 }
 0x645   : > { %v2389_v51 = vpop.eup %2388  ;;  %1692 = vst.msk [vmem:[%s483_s28 + $0x20] sm:$0xff] %vm1687_vm0, %v2387_v49 }
 0x646   : > { %v2391_v52 = vpop.eup %2390  ;;  %1695 = vst.msk [vmem:[%s483_s28 + $0x38] sm:$0xff] %vm1687_vm0, %v2389_v51 }
 0x647   : > { %1693 = vst.msk [vmem:[%s483_s28 + $0x28] sm:$0xff] %vm1687_vm0, %v2391_v52 }
 0x648   : > { %2661 = shalt.err (!%p2658_p5)
}
 0x649   : > { %s2662_s30 = scalar_lea.hbm %s3461_s18, 1024  ;;  %s2666_s24 = scalar_lea.hbm %s3580_s27, 2048 }
 0x64a   : > { %p2663_p9 = scmp.ne.s32.totalorder %s3461_s18, %s2662_s30  ;;  %p2667_p8 = scmp.lt.u32.totalorder %s3461_s18, %s3580_s27 }
 0x64b   : > { %p2668_p13 = scmp.lt.u32.totalorder %s2666_s24, %s2662_s30  ;;  %p2670_p10 = scmp.lt.u32.totalorder %s2662_s30, %s3461_s18 }
 0x64c   : > { %p2664_p11 = pnand %p2663_p9, %p3581_p7 }
 0x64d   : > { %p2669_p6 = por %p2668_p13, %p2667_p8 }
 0x64e   : > { %p2665_p1 = pneg %p2664_p11 }
 0x64f   : > { %p2671_p4 = por %p2670_p10, %p2669_p6 }
 0x651   : > { %p2672_p12 = pnand %p2671_p4, %p2665_p1 }
 0x653   : > { %2675 = shalt.err (!%p2672_p12)
}
 0x654   : > { %s2758_s3 = smov 128   ;;  %s2759_s23 = smov 8  }
 0x655   : > { %2189 = dma.vmem_to_hbm [thread:$0]  (%p3581_p7), %s3463_s20, 1024, %s3461_s18, %s1697_s15, %s2758_s3, %s2758_s3, %s2759_s23  }
 0x656 PF: > { %s3582_s6 = sld [smem:[#allocation26_spill]]  ;;  %s3583_s16 = sld [smem:[#allocation30_spill]] }
 0x657   : > { %p3585_p0 = scmp.ge.s32.totalorder %s2738_s12, 2 }
 0x65c   : > { %s1725_s21 = sand.u32 1, %s3582_s6   ;;  %p3584_p2 = scmp.ne.s32.totalorder %s3583_s16, 0 }
 0x65d   : > { %s1726_s28 = scalar_lea.sflag [#allocation4], %s1725_s21 }
 0x65e   : > { %p2221_p3 = pnand %p3585_p0, %p3584_p2 }
 0x660   : > { %2721 = dma.done.wait (!%p2221_p3), %s1726_s28, 1024  }
 0x661   : > { %2723 = vsyncadd (!%p2221_p3), %s1726_s28, 4294966272  ;;  %s3586_s12 = sld [smem:[#allocation28_spill]]  ;;  %s3587_s9 = sld [smem:[#allocation27_spill]] }
 0x662   : > { %s3588_s11 = sld [smem:[#allocation29_spill]]  ;;  %s3589_s30 = smov %s2730_s10 }
 0x667   : > { %p26_p5 = scmp.ge.s32.totalorder %s3586_s12, 4   ;;  %s3590_s10 = smov %s3587_s9 }
 0x669   :  { %28 = sbr.rel (!%p26_p5) target bundleno = 16 (0x10), region = 140 }
 0x670   :  { %1731 = vsyncpa [#allocation3], 1 }
 0x671   :  { %1733 = vsyncpa [#allocation3 + $0x1], 1 }
 0x672   :  { %1734 = vsyncpa [#allocation6], 1 }
 0x673   :  { %1735 = vsyncpa [#allocation10], 1 }
 0x674   :  { %1736 = vsyncpa [#allocation13], 1 }
 0x675   :  { %1737 = vsyncpa [#allocation16], 1 }
 0x676   :  { %1738 = vsyncpa [#allocation4], 1 }
 0x677   :  { %1740 = vsyncpa [#allocation4 + $0x1], 1 }

</bundles_post_ra>
